<compile_context>
chip_gen: v7x
topology: tpu7x:2x2x1
jax: 0.10.0
libtpu: 0.0.40
codegen_flags: <defaults>
</compile_context>

<pallas_src>
import math

import jax
import jax.numpy as jnp
from jax.experimental import pallas as pl
from jax.experimental.pallas import tpu as pltpu

# ---- small synthetic ViT config ---------------------------------------------
B = 2                     # batch
C = 3                     # image channels
IMG = 16                  # image height/width
P = 8                     # patch size
NP = (IMG // P) ** 2      # number of patches = 4
S = NP + 1                # real sequence length incl. CLS token = 5
SEQ = 8                   # padded sequence length (sublane-tile multiple)
CPP = C * P * P           # flattened patch dim = 192
H = 32                    # hidden size
NH = 2                    # attention heads
DH = H // NH              # head dim = 16
FF = 64                   # MLP intermediate size
NLAYERS = 2               # encoder layers
EPS = 1e-12               # ViT LayerNorm eps

# Set to jnp.bfloat16 on v6e / v7x for native-MXU matmul inputs (accumulation
# stays f32 via preferred_element_type).  Keep f32 on v5e / for bit-closeness
# to the PyTorch f32 reference.
MXU_DTYPE = jnp.float32


# ---- in-kernel helpers -------------------------------------------------------
def _layernorm(x, gamma, beta):
    mu = jnp.mean(x, axis=-1, keepdims=True)
    var = jnp.mean((x - mu) ** 2, axis=-1, keepdims=True)
    return (x - mu) * jax.lax.rsqrt(var + EPS) * gamma + beta


def _gelu_erf(x):
    # Exact (erf) GELU as used by HF ViT.  erf built from the Abramowitz-Stegun
    # 7.1.26 rational approximation (max abs err ~1.5e-7) using only exp/mul/
    # add/where, all of which lower cleanly on the TPU VPU/EUP.
    z = x * (1.0 / math.sqrt(2.0))
    a = jnp.abs(z)
    t = 1.0 / (1.0 + 0.3275911 * a)
    poly = t * (0.254829592 + t * (-0.284496736 + t * (1.421413741
               + t * (-1.453152027 + t * 1.061405429))))
    erf_abs = 1.0 - poly * jnp.exp(-a * a)
    erf = jnp.where(z < 0.0, -erf_abs, erf_abs)
    return 0.5 * x * (1.0 + erf)


def _mm(a, b):
    return jnp.dot(a.astype(MXU_DTYPE), b.astype(MXU_DTYPE),
                   preferred_element_type=jnp.float32)


def _mm_t(a, b):  # a @ b.T
    return jax.lax.dot_general(a.astype(MXU_DTYPE), b.astype(MXU_DTYPE),
                               (((1,), (1,)), ((), ())),
                               preferred_element_type=jnp.float32)


# ---- fused forward kernel ----------------------------------------------------
def vit_forward_kernel(patches_ref, emb_ref, mask_ref, wp_ref,
                       wqkv_ref, bqkv_ref, wo_ref, bo_ref,
                       g1_ref, be1_ref, w1_ref, fb1_ref, w2_ref, fb2_ref,
                       g2_ref, be2_ref, gf_ref, bf_ref, o_ref):
    # ---- ViTEmbeddings: patch projection + (CLS + positional) additive term.
    # patches are pre-padded to SEQ rows per sample (CLS slot & pad rows = 0),
    # emb carries cls+pos[0] on CLS rows, pos[i]+patch_bias on patch rows,
    # and 0 on pad rows -> one aligned GEMM + one add, no scratch stores.
    x = _mm(patches_ref[...], wp_ref[...]) + emb_ref[...]          # (B*SEQ, H)
    mask = mask_ref[...]                                            # (B*SEQ, B*SEQ)
    scale = 1.0 / math.sqrt(DH)

    for l in range(NLAYERS):                     # unrolled; visible to LLO
        # hoisted per-layer weight/bias reads
        g1 = g1_ref[l]; be1 = be1_ref[l]
        wqkv = wqkv_ref[l]; bqkv = bqkv_ref[l]
        wo = wo_ref[l]; bo = bo_ref[l]
        g2 = g2_ref[l]; be2 = be2_ref[l]
        w1 = w1_ref[l]; fb1 = fb1_ref[l]
        w2 = w2_ref[l]; fb2 = fb2_ref[l]

        # ---- attention block (pre-LN), block-diagonal across the batch ----
        h = _layernorm(x, g1, be1)
        qkv = _mm(h, wqkv) + bqkv                                   # (B*SEQ, 3H)
        acc = jnp.zeros((B * SEQ, H), jnp.float32)                  # vreg accumulator
        for hh in range(NH):
            c0 = hh * DH
            qh = qkv[:, c0:c0 + DH]
            kh = qkv[:, H + c0:H + c0 + DH]
            vh = qkv[:, 2 * H + c0:2 * H + c0 + DH]
            sc = _mm_t(qh, kh) * scale + mask                       # (B*SEQ, B*SEQ)
            sc = sc - jnp.max(sc, axis=-1, keepdims=True)
            p = jnp.exp(sc)
            p = p * pl.reciprocal(jnp.sum(p, axis=-1, keepdims=True),
                                  approx=True)
            ctx = _mm(p, vh)                                        # (B*SEQ, DH)
            # accumulate through the per-head row block of Wo (no head concat)
            acc = acc + _mm(ctx, wo[c0:c0 + DH, :])
        x = x + acc + bo                                            # residual 1

        # ---- MLP block (pre-LN) ----
        h2 = _layernorm(x, g2, be2)
        f = _mm(h2, w1) + fb1
        f = _gelu_erf(f)                                            # exact GELU (HF ViT)
        f = _mm(f, w2) + fb2
        x = x + f                                                   # residual 2

    # ---- final LayerNorm (ViTModel.layernorm) on the CLS rows only ----
    cls_rows = jnp.concatenate([x[b * SEQ:b * SEQ + 1, :] for b in range(B)],
                               axis=0)                              # (B, H)
    o_ref[...] = _layernorm(cls_rows, gf_ref[...], bf_ref[...])


# ---- wrapper -----------------------------------------------------------------
def _fs(shape):
    n = len(shape)
    return pl.BlockSpec(shape, lambda n=n: (0,) * n)


def patchify(img):
    """Conv2d(C->H, kernel=P, stride=P) as unfold: (B,C,IMG,IMG) -> (B, NP, C*P*P).
    Flatten order (C, P, P) matches PyTorch Conv2d weight.reshape(H, C*P*P)."""
    Bb, Cc, Hs, Ws = img.shape
    x = img.reshape(Bb, Cc, Hs // P, P, Ws // P, P)
    x = jnp.transpose(x, (0, 2, 4, 1, 3, 5))
    return x.reshape(Bb, (Hs // P) * (Ws // P), Cc * P * P)


def image_encoder_forward(image, params):
    # --- aligned, padded patch matrix: per-sample block of SEQ rows where
    # row 0 (CLS slot) and rows S..SEQ-1 are zero (their matmul output is 0).
    patches = patchify(image.astype(jnp.float32))                   # (B, NP, CPP)
    patches_pad = jnp.concatenate(
        [jnp.zeros((B, 1, CPP), jnp.float32), patches,
         jnp.zeros((B, SEQ - S, CPP), jnp.float32)], axis=1)
    patches_pad = patches_pad.reshape(B * SEQ, CPP)

    # --- additive embedding term (layout plumbing / parameter folding only):
    # CLS row: cls + pos[0]; patch rows: pos[i] + patch_bias; pad rows: 0.
    emb_rows = jnp.concatenate(
        [params["cls"] + params["pos"][0:1],
         params["pos"][1:S] + params["patch_b"],
         jnp.zeros((SEQ - S, H), jnp.float32)], axis=0)              # (SEQ, H)
    emb_add = jnp.tile(emb_rows, (B, 1))                             # (B*SEQ, H)

    # --- block-diagonal attention mask: 0 for within-sample valid keys,
    # -1e30 across samples and for padded key positions.
    r = jnp.arange(B * SEQ)
    same = (r[:, None] // SEQ) == (r[None, :] // SEQ)
    valid_key = (r[None, :] % SEQ) < S
    attn_mask = jnp.where(same & valid_key, 0.0, -1e30).astype(jnp.float32)

    # --- fused QKV projection weights (one lane-denser GEMM per layer).
    wqkv = jnp.concatenate([params["wq"], params["wk"], params["wv"]], axis=-1)
    bqkv = jnp.concatenate([params["bq"], params["bk"], params["bv"]], axis=-1)

    args = [patches_pad, emb_add, attn_mask, params["patch_w"],
            wqkv, bqkv, params["wo"], params["bo"],
            params["ln1_g"], params["ln1_b"],
            params["w1"], params["b1"], params["w2"], params["b2"],
            params["ln2_g"], params["ln2_b"],
            params["lnf_g"], params["lnf_b"]]

    # Single invocation (no grid), everything resident in VMEM, no scratch.
    return pl.pallas_call(
        vit_forward_kernel,
        out_shape=jax.ShapeDtypeStruct((B, H), jnp.float32),
        in_specs=[_fs(a.shape) for a in args],
        out_specs=pl.BlockSpec((B, H), lambda: (0, 0)),
    )(*args)


# ---- deterministic parameter init (synthetic weights; layout [in, out]) -------
def init_params(key):
    def dense(k, shape):
        return (jax.random.normal(k, shape, jnp.float32) * 0.02).astype(jnp.float32)

    ks = jax.random.split(key, 9)
    L = NLAYERS
    return {
        "patch_w": dense(ks[0], (CPP, H)),
        "patch_b": jnp.zeros((1, H), jnp.float32),
        "cls": dense(ks[1], (1, H)),
        "pos": dense(ks[2], (S, H)),
        "wq": dense(ks[3], (L, H, H)), "bq": jnp.zeros((L, 1, H), jnp.float32),
        "wk": dense(ks[4], (L, H, H)), "bk": jnp.zeros((L, 1, H), jnp.float32),
        "wv": dense(ks[5], (L, H, H)), "bv": jnp.zeros((L, 1, H), jnp.float32),
        "wo": dense(ks[6], (L, H, H)), "bo": jnp.zeros((L, 1, H), jnp.float32),
        "ln1_g": jnp.ones((L, 1, H), jnp.float32), "ln1_b": jnp.zeros((L, 1, H), jnp.float32),
        "w1": dense(ks[7], (L, H, FF)), "b1": jnp.zeros((L, 1, FF), jnp.float32),
        "w2": dense(ks[8], (L, FF, H)), "b2": jnp.zeros((L, 1, H), jnp.float32),
        "ln2_g": jnp.ones((L, 1, H), jnp.float32), "ln2_b": jnp.zeros((L, 1, H), jnp.float32),
        "lnf_g": jnp.ones((1, H), jnp.float32), "lnf_b": jnp.zeros((1, H), jnp.float32),
    }


# ---- main --------------------------------------------------------------------
if __name__ == "__main__":
    root = jax.random.PRNGKey(0)
    kp, kimg = jax.random.split(root)
    params = init_params(kp)

    image = jax.random.normal(kimg, (B, C, IMG, IMG), jnp.float32)

    out = image_encoder_forward(image, params)
    out = jax.block_until_ready(out)
    assert out.shape == (B, H) and out.dtype == jnp.float32
    assert bool(jnp.all(jnp.isfinite(out)))
    print("KERNEL_OK")
</pallas_src>

<mosaic_0001>
module attributes {stable_mosaic.version = 11 : i64} {
  func.func @vit_forward_kernel(%arg0: memref<16x192xf32, #tpu.memory_space<vmem>>, %arg1: memref<16x32xf32, #tpu.memory_space<vmem>>, %arg2: memref<16x16xf32, #tpu.memory_space<vmem>>, %arg3: memref<192x32xf32, #tpu.memory_space<vmem>>, %arg4: memref<2x32x96xf32, #tpu.memory_space<vmem>>, %arg5: memref<2x1x96xf32, #tpu.memory_space<vmem>>, %arg6: memref<2x32x32xf32, #tpu.memory_space<vmem>>, %arg7: memref<2x1x32xf32, #tpu.memory_space<vmem>>, %arg8: memref<2x1x32xf32, #tpu.memory_space<vmem>>, %arg9: memref<2x1x32xf32, #tpu.memory_space<vmem>>, %arg10: memref<2x32x64xf32, #tpu.memory_space<vmem>>, %arg11: memref<2x1x64xf32, #tpu.memory_space<vmem>>, %arg12: memref<2x64x32xf32, #tpu.memory_space<vmem>>, %arg13: memref<2x1x32xf32, #tpu.memory_space<vmem>>, %arg14: memref<2x1x32xf32, #tpu.memory_space<vmem>>, %arg15: memref<2x1x32xf32, #tpu.memory_space<vmem>>, %arg16: memref<1x32xf32, #tpu.memory_space<vmem>>, %arg17: memref<1x32xf32, #tpu.memory_space<vmem>>, %arg18: memref<2x32xf32, #tpu.memory_space<vmem>>) attributes {dimension_semantics = [], scalar_prefetch = 0 : i64, scratch_operands = 0 : i64, tpu.core_type = #tpu.core_type<tc>} {
    %c0 = arith.constant 0 : index
    %c0_0 = arith.constant 0 : index
    %0 = vector.load %arg0[%c0, %c0_0] : memref<16x192xf32, #tpu.memory_space<vmem>>, vector<16x192xf32>
    %c0_1 = arith.constant 0 : index
    %c0_2 = arith.constant 0 : index
    %1 = vector.load %arg3[%c0_1, %c0_2] : memref<192x32xf32, #tpu.memory_space<vmem>>, vector<192x32xf32>
    %cst = arith.constant dense<0.000000e+00> : vector<16x32xf32>
    %2 = tpu.matmul %0, %1, %cst {dimension_numbers = #tpu.dot_dimension_numbers<[1], [0], [0], [1], [0, 0, 1, 1], [], []>} : vector<16x192xf32>, vector<192x32xf32>, vector<16x32xf32> -> vector<16x32xf32>
    %c0_3 = arith.constant 0 : index
    %c0_4 = arith.constant 0 : index
    %3 = vector.load %arg1[%c0_3, %c0_4] : memref<16x32xf32, #tpu.memory_space<vmem>>, vector<16x32xf32>
    %4 = arith.addf %2, %3 : vector<16x32xf32>
    %c0_5 = arith.constant 0 : index
    %c0_6 = arith.constant 0 : index
    %5 = vector.load %arg2[%c0_5, %c0_6] : memref<16x16xf32, #tpu.memory_space<vmem>>, vector<16x16xf32>
    %c0_7 = arith.constant 0 : index
    %c0_8 = arith.constant 0 : index
    %c0_9 = arith.constant 0 : index
    %6 = vector.load %arg8[%c0_7, %c0_8, %c0_9] : memref<2x1x32xf32, #tpu.memory_space<vmem>>, vector<1x1x32xf32>
    %7 = vector.shape_cast %6 : vector<1x1x32xf32> to vector<1x32xf32>
    %c0_10 = arith.constant 0 : index
    %c0_11 = arith.constant 0 : index
    %c0_12 = arith.constant 0 : index
    %8 = vector.load %arg9[%c0_10, %c0_11, %c0_12] : memref<2x1x32xf32, #tpu.memory_space<vmem>>, vector<1x1x32xf32>
    %9 = vector.shape_cast %8 : vector<1x1x32xf32> to vector<1x32xf32>
    %c0_13 = arith.constant 0 : index
    %c0_14 = arith.constant 0 : index
    %c0_15 = arith.constant 0 : index
    %10 = vector.load %arg4[%c0_13, %c0_14, %c0_15] : memref<2x32x96xf32, #tpu.memory_space<vmem>>, vector<1x32x96xf32>
    %11 = vector.shape_cast %10 : vector<1x32x96xf32> to vector<32x96xf32>
    %c0_16 = arith.constant 0 : index
    %c0_17 = arith.constant 0 : index
    %c0_18 = arith.constant 0 : index
    %12 = vector.load %arg5[%c0_16, %c0_17, %c0_18] : memref<2x1x96xf32, #tpu.memory_space<vmem>>, vector<1x1x96xf32>
    %13 = vector.shape_cast %12 : vector<1x1x96xf32> to vector<1x96xf32>
    %c0_19 = arith.constant 0 : index
    %c0_20 = arith.constant 0 : index
    %c0_21 = arith.constant 0 : index
    %14 = vector.load %arg6[%c0_19, %c0_20, %c0_21] : memref<2x32x32xf32, #tpu.memory_space<vmem>>, vector<1x32x32xf32>
    %15 = vector.shape_cast %14 : vector<1x32x32xf32> to vector<32x32xf32>
    %c0_22 = arith.constant 0 : index
    %c0_23 = arith.constant 0 : index
    %c0_24 = arith.constant 0 : index
    %16 = vector.load %arg7[%c0_22, %c0_23, %c0_24] : memref<2x1x32xf32, #tpu.memory_space<vmem>>, vector<1x1x32xf32>
    %17 = vector.shape_cast %16 : vector<1x1x32xf32> to vector<1x32xf32>
    %c0_25 = arith.constant 0 : index
    %c0_26 = arith.constant 0 : index
    %c0_27 = arith.constant 0 : index
    %18 = vector.load %arg14[%c0_25, %c0_26, %c0_27] : memref<2x1x32xf32, #tpu.memory_space<vmem>>, vector<1x1x32xf32>
    %19 = vector.shape_cast %18 : vector<1x1x32xf32> to vector<1x32xf32>
    %c0_28 = arith.constant 0 : index
    %c0_29 = arith.constant 0 : index
    %c0_30 = arith.constant 0 : index
    %20 = vector.load %arg15[%c0_28, %c0_29, %c0_30] : memref<2x1x32xf32, #tpu.memory_space<vmem>>, vector<1x1x32xf32>
    %21 = vector.shape_cast %20 : vector<1x1x32xf32> to vector<1x32xf32>
    %c0_31 = arith.constant 0 : index
    %c0_32 = arith.constant 0 : index
    %c0_33 = arith.constant 0 : index
    %22 = vector.load %arg10[%c0_31, %c0_32, %c0_33] : memref<2x32x64xf32, #tpu.memory_space<vmem>>, vector<1x32x64xf32>
    %23 = vector.shape_cast %22 : vector<1x32x64xf32> to vector<32x64xf32>
    %c0_34 = arith.constant 0 : index
    %c0_35 = arith.constant 0 : index
    %c0_36 = arith.constant 0 : index
    %24 = vector.load %arg11[%c0_34, %c0_35, %c0_36] : memref<2x1x64xf32, #tpu.memory_space<vmem>>, vector<1x1x64xf32>
    %25 = vector.shape_cast %24 : vector<1x1x64xf32> to vector<1x64xf32>
    %c0_37 = arith.constant 0 : index
    %c0_38 = arith.constant 0 : index
    %c0_39 = arith.constant 0 : index
    %26 = vector.load %arg12[%c0_37, %c0_38, %c0_39] : memref<2x64x32xf32, #tpu.memory_space<vmem>>, vector<1x64x32xf32>
    %27 = vector.shape_cast %26 : vector<1x64x32xf32> to vector<64x32xf32>
    %c0_40 = arith.constant 0 : index
    %c0_41 = arith.constant 0 : index
    %c0_42 = arith.constant 0 : index
    %28 = vector.load %arg13[%c0_40, %c0_41, %c0_42] : memref<2x1x32xf32, #tpu.memory_space<vmem>>, vector<1x1x32xf32>
    %29 = vector.shape_cast %28 : vector<1x1x32xf32> to vector<1x32xf32>
    %cst_43 = arith.constant dense<0.000000e+00> : vector<16xf32>
    %30 = vector.multi_reduction <add>, %4, %cst_43 [1] : vector<16x32xf32> to vector<16xf32>
    %31 = vector.shape_cast %30 : vector<16xf32> to vector<16x1xf32>
    %cst_44 = arith.constant 3.200000e+01 : f32
    %32 = vector.broadcast %cst_44 : f32 to vector<16x1xf32>
    %33 = arith.divf %31, %32 : vector<16x1xf32>
    %34 = vector.broadcast %33 : vector<16x1xf32> to vector<16x32xf32>
    %35 = arith.subf %4, %34 : vector<16x32xf32>
    %36 = arith.mulf %35, %35 : vector<16x32xf32>
    %cst_45 = arith.constant dense<0.000000e+00> : vector<16xf32>
    %37 = vector.multi_reduction <add>, %36, %cst_45 [1] : vector<16x32xf32> to vector<16xf32>
    %38 = vector.shape_cast %37 : vector<16xf32> to vector<16x1xf32>
    %cst_46 = arith.constant 3.200000e+01 : f32
    %39 = vector.broadcast %cst_46 : f32 to vector<16x1xf32>
    %40 = arith.divf %38, %39 : vector<16x1xf32>
    %41 = vector.broadcast %33 : vector<16x1xf32> to vector<16x32xf32>
    %42 = arith.subf %4, %41 : vector<16x32xf32>
    %cst_47 = arith.constant 9.99999996E-13 : f32
    %43 = vector.broadcast %cst_47 : f32 to vector<16x1xf32>
    %44 = arith.addf %40, %43 : vector<16x1xf32>
    %45 = math.rsqrt %44 : vector<16x1xf32>
    %46 = vector.broadcast %45 : vector<16x1xf32> to vector<16x32xf32>
    %47 = arith.mulf %42, %46 : vector<16x32xf32>
    %48 = vector.broadcast %7 : vector<1x32xf32> to vector<16x32xf32>
    %49 = arith.mulf %47, %48 : vector<16x32xf32>
    %50 = vector.broadcast %9 : vector<1x32xf32> to vector<16x32xf32>
    %51 = arith.addf %49, %50 : vector<16x32xf32>
    %cst_48 = arith.constant dense<0.000000e+00> : vector<16x96xf32>
    %52 = tpu.matmul %51, %11, %cst_48 {dimension_numbers = #tpu.dot_dimension_numbers<[1], [0], [0], [1], [0, 0, 1, 1], [], []>} : vector<16x32xf32>, vector<32x96xf32>, vector<16x96xf32> -> vector<16x96xf32>
    %53 = vector.broadcast %13 : vector<1x96xf32> to vector<16x96xf32>
    %54 = arith.addf %52, %53 : vector<16x96xf32>
    %cst_49 = arith.constant 0.000000e+00 : f32
    %55 = vector.broadcast %cst_49 : f32 to vector<16x32xf32>
    %56 = vector.extract_strided_slice %54 {offsets = [0, 0], sizes = [16, 16], strides = [1, 1]} : vector<16x96xf32> to vector<16x16xf32>
    %57 = vector.extract_strided_slice %54 {offsets = [0, 32], sizes = [16, 16], strides = [1, 1]} : vector<16x96xf32> to vector<16x16xf32>
    %58 = vector.extract_strided_slice %54 {offsets = [0, 64], sizes = [16, 16], strides = [1, 1]} : vector<16x96xf32> to vector<16x16xf32>
    %cst_50 = arith.constant dense<0.000000e+00> : vector<16x16xf32>
    %59 = tpu.matmul %56, %57, %cst_50 {dimension_numbers = #tpu.dot_dimension_numbers<[1], [1], [0], [0], [0, 0, 1, 0], [], []>} : vector<16x16xf32>, vector<16x16xf32>, vector<16x16xf32> -> vector<16x16xf32>
    %cst_51 = arith.constant 2.500000e-01 : f32
    %60 = vector.broadcast %cst_51 : f32 to vector<16x16xf32>
    %61 = arith.mulf %59, %60 : vector<16x16xf32>
    %62 = arith.addf %61, %5 : vector<16x16xf32>
    %cst_52 = arith.constant dense<0xFF800000> : vector<16xf32>
    %63 = vector.multi_reduction <maximumf>, %62, %cst_52 [1] : vector<16x16xf32> to vector<16xf32>
    %64 = vector.shape_cast %63 : vector<16xf32> to vector<16x1xf32>
    %65 = vector.broadcast %64 : vector<16x1xf32> to vector<16x16xf32>
    %66 = arith.subf %62, %65 : vector<16x16xf32>
    %67 = math.exp %66 : vector<16x16xf32>
    %cst_53 = arith.constant dense<0.000000e+00> : vector<16xf32>
    %68 = vector.multi_reduction <add>, %67, %cst_53 [1] : vector<16x16xf32> to vector<16xf32>
    %69 = vector.shape_cast %68 : vector<16xf32> to vector<16x1xf32>
    %70 = tpu.reciprocal %69 {approx = true} : vector<16x1xf32> -> vector<16x1xf32>
    %71 = vector.broadcast %70 : vector<16x1xf32> to vector<16x16xf32>
    %72 = arith.mulf %67, %71 : vector<16x16xf32>
    %cst_54 = arith.constant dense<0.000000e+00> : vector<16x16xf32>
    %73 = tpu.matmul %72, %58, %cst_54 {dimension_numbers = #tpu.dot_dimension_numbers<[1], [0], [0], [1], [0, 0, 1, 1], [], []>} : vector<16x16xf32>, vector<16x16xf32>, vector<16x16xf32> -> vector<16x16xf32>
    %74 = vector.extract_strided_slice %15 {offsets = [0, 0], sizes = [16, 32], strides = [1, 1]} : vector<32x32xf32> to vector<16x32xf32>
    %cst_55 = arith.constant dense<0.000000e+00> : vector<16x32xf32>
    %75 = tpu.matmul %73, %74, %cst_55 {dimension_numbers = #tpu.dot_dimension_numbers<[1], [0], [0], [1], [0, 0, 1, 1], [], []>} : vector<16x16xf32>, vector<16x32xf32>, vector<16x32xf32> -> vector<16x32xf32>
    %76 = arith.addf %55, %75 : vector<16x32xf32>
    %77 = vector.extract_strided_slice %54 {offsets = [0, 16], sizes = [16, 16], strides = [1, 1]} : vector<16x96xf32> to vector<16x16xf32>
    %78 = vector.extract_strided_slice %54 {offsets = [0, 48], sizes = [16, 16], strides = [1, 1]} : vector<16x96xf32> to vector<16x16xf32>
    %79 = vector.extract_strided_slice %54 {offsets = [0, 80], sizes = [16, 16], strides = [1, 1]} : vector<16x96xf32> to vector<16x16xf32>
    %cst_56 = arith.constant dense<0.000000e+00> : vector<16x16xf32>
    %80 = tpu.matmul %77, %78, %cst_56 {dimension_numbers = #tpu.dot_dimension_numbers<[1], [1], [0], [0], [0, 0, 1, 0], [], []>} : vector<16x16xf32>, vector<16x16xf32>, vector<16x16xf32> -> vector<16x16xf32>
    %cst_57 = arith.constant 2.500000e-01 : f32
    %81 = vector.broadcast %cst_57 : f32 to vector<16x16xf32>
    %82 = arith.mulf %80, %81 : vector<16x16xf32>
    %83 = arith.addf %82, %5 : vector<16x16xf32>
    %cst_58 = arith.constant dense<0xFF800000> : vector<16xf32>
    %84 = vector.multi_reduction <maximumf>, %83, %cst_58 [1] : vector<16x16xf32> to vector<16xf32>
    %85 = vector.shape_cast %84 : vector<16xf32> to vector<16x1xf32>
    %86 = vector.broadcast %85 : vector<16x1xf32> to vector<16x16xf32>
    %87 = arith.subf %83, %86 : vector<16x16xf32>
    %88 = math.exp %87 : vector<16x16xf32>
    %cst_59 = arith.constant dense<0.000000e+00> : vector<16xf32>
    %89 = vector.multi_reduction <add>, %88, %cst_59 [1] : vector<16x16xf32> to vector<16xf32>
    %90 = vector.shape_cast %89 : vector<16xf32> to vector<16x1xf32>
    %91 = tpu.reciprocal %90 {approx = true} : vector<16x1xf32> -> vector<16x1xf32>
    %92 = vector.broadcast %91 : vector<16x1xf32> to vector<16x16xf32>
    %93 = arith.mulf %88, %92 : vector<16x16xf32>
    %cst_60 = arith.constant dense<0.000000e+00> : vector<16x16xf32>
    %94 = tpu.matmul %93, %79, %cst_60 {dimension_numbers = #tpu.dot_dimension_numbers<[1], [0], [0], [1], [0, 0, 1, 1], [], []>} : vector<16x16xf32>, vector<16x16xf32>, vector<16x16xf32> -> vector<16x16xf32>
    %95 = vector.extract_strided_slice %15 {offsets = [16, 0], sizes = [16, 32], strides = [1, 1]} : vector<32x32xf32> to vector<16x32xf32>
    %cst_61 = arith.constant dense<0.000000e+00> : vector<16x32xf32>
    %96 = tpu.matmul %94, %95, %cst_61 {dimension_numbers = #tpu.dot_dimension_numbers<[1], [0], [0], [1], [0, 0, 1, 1], [], []>} : vector<16x16xf32>, vector<16x32xf32>, vector<16x32xf32> -> vector<16x32xf32>
    %97 = arith.addf %76, %96 : vector<16x32xf32>
    %98 = arith.addf %4, %97 : vector<16x32xf32>
    %99 = vector.broadcast %17 : vector<1x32xf32> to vector<16x32xf32>
    %100 = arith.addf %98, %99 : vector<16x32xf32>
    %cst_62 = arith.constant dense<0.000000e+00> : vector<16xf32>
    %101 = vector.multi_reduction <add>, %100, %cst_62 [1] : vector<16x32xf32> to vector<16xf32>
    %102 = vector.shape_cast %101 : vector<16xf32> to vector<16x1xf32>
    %cst_63 = arith.constant 3.200000e+01 : f32
    %103 = vector.broadcast %cst_63 : f32 to vector<16x1xf32>
    %104 = arith.divf %102, %103 : vector<16x1xf32>
    %105 = vector.broadcast %104 : vector<16x1xf32> to vector<16x32xf32>
    %106 = arith.subf %100, %105 : vector<16x32xf32>
    %107 = arith.mulf %106, %106 : vector<16x32xf32>
    %cst_64 = arith.constant dense<0.000000e+00> : vector<16xf32>
    %108 = vector.multi_reduction <add>, %107, %cst_64 [1] : vector<16x32xf32> to vector<16xf32>
    %109 = vector.shape_cast %108 : vector<16xf32> to vector<16x1xf32>
    %cst_65 = arith.constant 3.200000e+01 : f32
    %110 = vector.broadcast %cst_65 : f32 to vector<16x1xf32>
    %111 = arith.divf %109, %110 : vector<16x1xf32>
    %112 = vector.broadcast %104 : vector<16x1xf32> to vector<16x32xf32>
    %113 = arith.subf %100, %112 : vector<16x32xf32>
    %cst_66 = arith.constant 9.99999996E-13 : f32
    %114 = vector.broadcast %cst_66 : f32 to vector<16x1xf32>
    %115 = arith.addf %111, %114 : vector<16x1xf32>
    %116 = math.rsqrt %115 : vector<16x1xf32>
    %117 = vector.broadcast %116 : vector<16x1xf32> to vector<16x32xf32>
    %118 = arith.mulf %113, %117 : vector<16x32xf32>
    %119 = vector.broadcast %19 : vector<1x32xf32> to vector<16x32xf32>
    %120 = arith.mulf %118, %119 : vector<16x32xf32>
    %121 = vector.broadcast %21 : vector<1x32xf32> to vector<16x32xf32>
    %122 = arith.addf %120, %121 : vector<16x32xf32>
    %cst_67 = arith.constant dense<0.000000e+00> : vector<16x64xf32>
    %123 = tpu.matmul %122, %23, %cst_67 {dimension_numbers = #tpu.dot_dimension_numbers<[1], [0], [0], [1], [0, 0, 1, 1], [], []>} : vector<16x32xf32>, vector<32x64xf32>, vector<16x64xf32> -> vector<16x64xf32>
    %124 = vector.broadcast %25 : vector<1x64xf32> to vector<16x64xf32>
    %125 = arith.addf %123, %124 : vector<16x64xf32>
    %cst_68 = arith.constant 0.707106769 : f32
    %126 = vector.broadcast %cst_68 : f32 to vector<16x64xf32>
    %127 = arith.mulf %125, %126 : vector<16x64xf32>
    %128 = math.absf %127 : vector<16x64xf32>
    %cst_69 = arith.constant 0.327591091 : f32
    %129 = vector.broadcast %cst_69 : f32 to vector<16x64xf32>
    %130 = arith.mulf %129, %128 : vector<16x64xf32>
    %cst_70 = arith.constant 1.000000e+00 : f32
    %131 = vector.broadcast %cst_70 : f32 to vector<16x64xf32>
    %132 = arith.addf %131, %130 : vector<16x64xf32>
    %cst_71 = arith.constant 1.000000e+00 : f32
    %133 = vector.broadcast %cst_71 : f32 to vector<16x64xf32>
    %134 = arith.divf %133, %132 : vector<16x64xf32>
    %cst_72 = arith.constant 1.06140542 : f32
    %135 = vector.broadcast %cst_72 : f32 to vector<16x64xf32>
    %136 = arith.mulf %134, %135 : vector<16x64xf32>
    %cst_73 = arith.constant -1.45315206 : f32
    %137 = vector.broadcast %cst_73 : f32 to vector<16x64xf32>
    %138 = arith.addf %137, %136 : vector<16x64xf32>
    %139 = arith.mulf %134, %138 : vector<16x64xf32>
    %cst_74 = arith.constant 1.42141378 : f32
    %140 = vector.broadcast %cst_74 : f32 to vector<16x64xf32>
    %141 = arith.addf %140, %139 : vector<16x64xf32>
    %142 = arith.mulf %134, %141 : vector<16x64xf32>
    %cst_75 = arith.constant -0.284496725 : f32
    %143 = vector.broadcast %cst_75 : f32 to vector<16x64xf32>
    %144 = arith.addf %143, %142 : vector<16x64xf32>
    %145 = arith.mulf %134, %144 : vector<16x64xf32>
    %cst_76 = arith.constant 0.254829586 : f32
    %146 = vector.broadcast %cst_76 : f32 to vector<16x64xf32>
    %147 = arith.addf %146, %145 : vector<16x64xf32>
    %148 = arith.mulf %134, %147 : vector<16x64xf32>
    %cst_77 = arith.constant 0.000000e+00 : f32
    %149 = vector.broadcast %cst_77 : f32 to vector<16x64xf32>
    %150 = arith.subf %149, %128 : vector<16x64xf32>
    %151 = arith.mulf %150, %128 : vector<16x64xf32>
    %152 = math.exp %151 : vector<16x64xf32>
    %153 = arith.mulf %148, %152 : vector<16x64xf32>
    %cst_78 = arith.constant 1.000000e+00 : f32
    %154 = vector.broadcast %cst_78 : f32 to vector<16x64xf32>
    %155 = arith.subf %154, %153 : vector<16x64xf32>
    %cst_79 = arith.constant 0.000000e+00 : f32
    %156 = vector.broadcast %cst_79 : f32 to vector<16x64xf32>
    %157 = arith.cmpf olt, %127, %156 : vector<16x64xf32>
    %cst_80 = arith.constant 0.000000e+00 : f32
    %158 = vector.broadcast %cst_80 : f32 to vector<16x64xf32>
    %159 = arith.subf %158, %155 : vector<16x64xf32>
    %160 = arith.select %157, %159, %155 : vector<16x64xi1>, vector<16x64xf32>
    %cst_81 = arith.constant 5.000000e-01 : f32
    %161 = vector.broadcast %cst_81 : f32 to vector<16x64xf32>
    %162 = arith.mulf %161, %125 : vector<16x64xf32>
    %cst_82 = arith.constant 1.000000e+00 : f32
    %163 = vector.broadcast %cst_82 : f32 to vector<16x64xf32>
    %164 = arith.addf %163, %160 : vector<16x64xf32>
    %165 = arith.mulf %162, %164 : vector<16x64xf32>
    %cst_83 = arith.constant dense<0.000000e+00> : vector<16x32xf32>
    %166 = tpu.matmul %165, %27, %cst_83 {dimension_numbers = #tpu.dot_dimension_numbers<[1], [0], [0], [1], [0, 0, 1, 1], [], []>} : vector<16x64xf32>, vector<64x32xf32>, vector<16x32xf32> -> vector<16x32xf32>
    %167 = vector.broadcast %29 : vector<1x32xf32> to vector<16x32xf32>
    %168 = arith.addf %166, %167 : vector<16x32xf32>
    %169 = arith.addf %100, %168 : vector<16x32xf32>
    %c1 = arith.constant 1 : index
    %c0_84 = arith.constant 0 : index
    %c0_85 = arith.constant 0 : index
    %170 = vector.load %arg8[%c1, %c0_84, %c0_85] : memref<2x1x32xf32, #tpu.memory_space<vmem>>, vector<1x1x32xf32>
    %171 = vector.shape_cast %170 : vector<1x1x32xf32> to vector<1x32xf32>
    %c1_86 = arith.constant 1 : index
    %c0_87 = arith.constant 0 : index
    %c0_88 = arith.constant 0 : index
    %172 = vector.load %arg9[%c1_86, %c0_87, %c0_88] : memref<2x1x32xf32, #tpu.memory_space<vmem>>, vector<1x1x32xf32>
    %173 = vector.shape_cast %172 : vector<1x1x32xf32> to vector<1x32xf32>
    %c1_89 = arith.constant 1 : index
    %c0_90 = arith.constant 0 : index
    %c0_91 = arith.constant 0 : index
    %174 = vector.load %arg4[%c1_89, %c0_90, %c0_91] : memref<2x32x96xf32, #tpu.memory_space<vmem>>, vector<1x32x96xf32>
    %175 = vector.shape_cast %174 : vector<1x32x96xf32> to vector<32x96xf32>
    %c1_92 = arith.constant 1 : index
    %c0_93 = arith.constant 0 : index
    %c0_94 = arith.constant 0 : index
    %176 = vector.load %arg5[%c1_92, %c0_93, %c0_94] : memref<2x1x96xf32, #tpu.memory_space<vmem>>, vector<1x1x96xf32>
    %177 = vector.shape_cast %176 : vector<1x1x96xf32> to vector<1x96xf32>
    %c1_95 = arith.constant 1 : index
    %c0_96 = arith.constant 0 : index
    %c0_97 = arith.constant 0 : index
    %178 = vector.load %arg6[%c1_95, %c0_96, %c0_97] : memref<2x32x32xf32, #tpu.memory_space<vmem>>, vector<1x32x32xf32>
    %179 = vector.shape_cast %178 : vector<1x32x32xf32> to vector<32x32xf32>
    %c1_98 = arith.constant 1 : index
    %c0_99 = arith.constant 0 : index
    %c0_100 = arith.constant 0 : index
    %180 = vector.load %arg7[%c1_98, %c0_99, %c0_100] : memref<2x1x32xf32, #tpu.memory_space<vmem>>, vector<1x1x32xf32>
    %181 = vector.shape_cast %180 : vector<1x1x32xf32> to vector<1x32xf32>
    %c1_101 = arith.constant 1 : index
    %c0_102 = arith.constant 0 : index
    %c0_103 = arith.constant 0 : index
    %182 = vector.load %arg14[%c1_101, %c0_102, %c0_103] : memref<2x1x32xf32, #tpu.memory_space<vmem>>, vector<1x1x32xf32>
    %183 = vector.shape_cast %182 : vector<1x1x32xf32> to vector<1x32xf32>
    %c1_104 = arith.constant 1 : index
    %c0_105 = arith.constant 0 : index
    %c0_106 = arith.constant 0 : index
    %184 = vector.load %arg15[%c1_104, %c0_105, %c0_106] : memref<2x1x32xf32, #tpu.memory_space<vmem>>, vector<1x1x32xf32>
    %185 = vector.shape_cast %184 : vector<1x1x32xf32> to vector<1x32xf32>
    %c1_107 = arith.constant 1 : index
    %c0_108 = arith.constant 0 : index
    %c0_109 = arith.constant 0 : index
    %186 = vector.load %arg10[%c1_107, %c0_108, %c0_109] : memref<2x32x64xf32, #tpu.memory_space<vmem>>, vector<1x32x64xf32>
    %187 = vector.shape_cast %186 : vector<1x32x64xf32> to vector<32x64xf32>
    %c1_110 = arith.constant 1 : index
    %c0_111 = arith.constant 0 : index
    %c0_112 = arith.constant 0 : index
    %188 = vector.load %arg11[%c1_110, %c0_111, %c0_112] : memref<2x1x64xf32, #tpu.memory_space<vmem>>, vector<1x1x64xf32>
    %189 = vector.shape_cast %188 : vector<1x1x64xf32> to vector<1x64xf32>
    %c1_113 = arith.constant 1 : index
    %c0_114 = arith.constant 0 : index
    %c0_115 = arith.constant 0 : index
    %190 = vector.load %arg12[%c1_113, %c0_114, %c0_115] : memref<2x64x32xf32, #tpu.memory_space<vmem>>, vector<1x64x32xf32>
    %191 = vector.shape_cast %190 : vector<1x64x32xf32> to vector<64x32xf32>
    %c1_116 = arith.constant 1 : index
    %c0_117 = arith.constant 0 : index
    %c0_118 = arith.constant 0 : index
    %192 = vector.load %arg13[%c1_116, %c0_117, %c0_118] : memref<2x1x32xf32, #tpu.memory_space<vmem>>, vector<1x1x32xf32>
    %193 = vector.shape_cast %192 : vector<1x1x32xf32> to vector<1x32xf32>
    %cst_119 = arith.constant dense<0.000000e+00> : vector<16xf32>
    %194 = vector.multi_reduction <add>, %169, %cst_119 [1] : vector<16x32xf32> to vector<16xf32>
    %195 = vector.shape_cast %194 : vector<16xf32> to vector<16x1xf32>
    %cst_120 = arith.constant 3.200000e+01 : f32
    %196 = vector.broadcast %cst_120 : f32 to vector<16x1xf32>
    %197 = arith.divf %195, %196 : vector<16x1xf32>
    %198 = vector.broadcast %197 : vector<16x1xf32> to vector<16x32xf32>
    %199 = arith.subf %169, %198 : vector<16x32xf32>
    %200 = arith.mulf %199, %199 : vector<16x32xf32>
    %cst_121 = arith.constant dense<0.000000e+00> : vector<16xf32>
    %201 = vector.multi_reduction <add>, %200, %cst_121 [1] : vector<16x32xf32> to vector<16xf32>
    %202 = vector.shape_cast %201 : vector<16xf32> to vector<16x1xf32>
    %cst_122 = arith.constant 3.200000e+01 : f32
    %203 = vector.broadcast %cst_122 : f32 to vector<16x1xf32>
    %204 = arith.divf %202, %203 : vector<16x1xf32>
    %205 = vector.broadcast %197 : vector<16x1xf32> to vector<16x32xf32>
    %206 = arith.subf %169, %205 : vector<16x32xf32>
    %cst_123 = arith.constant 9.99999996E-13 : f32
    %207 = vector.broadcast %cst_123 : f32 to vector<16x1xf32>
    %208 = arith.addf %204, %207 : vector<16x1xf32>
    %209 = math.rsqrt %208 : vector<16x1xf32>
    %210 = vector.broadcast %209 : vector<16x1xf32> to vector<16x32xf32>
    %211 = arith.mulf %206, %210 : vector<16x32xf32>
    %212 = vector.broadcast %171 : vector<1x32xf32> to vector<16x32xf32>
    %213 = arith.mulf %211, %212 : vector<16x32xf32>
    %214 = vector.broadcast %173 : vector<1x32xf32> to vector<16x32xf32>
    %215 = arith.addf %213, %214 : vector<16x32xf32>
    %cst_124 = arith.constant dense<0.000000e+00> : vector<16x96xf32>
    %216 = tpu.matmul %215, %175, %cst_124 {dimension_numbers = #tpu.dot_dimension_numbers<[1], [0], [0], [1], [0, 0, 1, 1], [], []>} : vector<16x32xf32>, vector<32x96xf32>, vector<16x96xf32> -> vector<16x96xf32>
    %217 = vector.broadcast %177 : vector<1x96xf32> to vector<16x96xf32>
    %218 = arith.addf %216, %217 : vector<16x96xf32>
    %cst_125 = arith.constant 0.000000e+00 : f32
    %219 = vector.broadcast %cst_125 : f32 to vector<16x32xf32>
    %220 = vector.extract_strided_slice %218 {offsets = [0, 0], sizes = [16, 16], strides = [1, 1]} : vector<16x96xf32> to vector<16x16xf32>
    %221 = vector.extract_strided_slice %218 {offsets = [0, 32], sizes = [16, 16], strides = [1, 1]} : vector<16x96xf32> to vector<16x16xf32>
    %222 = vector.extract_strided_slice %218 {offsets = [0, 64], sizes = [16, 16], strides = [1, 1]} : vector<16x96xf32> to vector<16x16xf32>
    %cst_126 = arith.constant dense<0.000000e+00> : vector<16x16xf32>
    %223 = tpu.matmul %220, %221, %cst_126 {dimension_numbers = #tpu.dot_dimension_numbers<[1], [1], [0], [0], [0, 0, 1, 0], [], []>} : vector<16x16xf32>, vector<16x16xf32>, vector<16x16xf32> -> vector<16x16xf32>
    %cst_127 = arith.constant 2.500000e-01 : f32
    %224 = vector.broadcast %cst_127 : f32 to vector<16x16xf32>
    %225 = arith.mulf %223, %224 : vector<16x16xf32>
    %226 = arith.addf %225, %5 : vector<16x16xf32>
    %cst_128 = arith.constant dense<0xFF800000> : vector<16xf32>
    %227 = vector.multi_reduction <maximumf>, %226, %cst_128 [1] : vector<16x16xf32> to vector<16xf32>
    %228 = vector.shape_cast %227 : vector<16xf32> to vector<16x1xf32>
    %229 = vector.broadcast %228 : vector<16x1xf32> to vector<16x16xf32>
    %230 = arith.subf %226, %229 : vector<16x16xf32>
    %231 = math.exp %230 : vector<16x16xf32>
    %cst_129 = arith.constant dense<0.000000e+00> : vector<16xf32>
    %232 = vector.multi_reduction <add>, %231, %cst_129 [1] : vector<16x16xf32> to vector<16xf32>
    %233 = vector.shape_cast %232 : vector<16xf32> to vector<16x1xf32>
    %234 = tpu.reciprocal %233 {approx = true} : vector<16x1xf32> -> vector<16x1xf32>
    %235 = vector.broadcast %234 : vector<16x1xf32> to vector<16x16xf32>
    %236 = arith.mulf %231, %235 : vector<16x16xf32>
    %cst_130 = arith.constant dense<0.000000e+00> : vector<16x16xf32>
    %237 = tpu.matmul %236, %222, %cst_130 {dimension_numbers = #tpu.dot_dimension_numbers<[1], [0], [0], [1], [0, 0, 1, 1], [], []>} : vector<16x16xf32>, vector<16x16xf32>, vector<16x16xf32> -> vector<16x16xf32>
    %238 = vector.extract_strided_slice %179 {offsets = [0, 0], sizes = [16, 32], strides = [1, 1]} : vector<32x32xf32> to vector<16x32xf32>
    %cst_131 = arith.constant dense<0.000000e+00> : vector<16x32xf32>
    %239 = tpu.matmul %237, %238, %cst_131 {dimension_numbers = #tpu.dot_dimension_numbers<[1], [0], [0], [1], [0, 0, 1, 1], [], []>} : vector<16x16xf32>, vector<16x32xf32>, vector<16x32xf32> -> vector<16x32xf32>
    %240 = arith.addf %219, %239 : vector<16x32xf32>
    %241 = vector.extract_strided_slice %218 {offsets = [0, 16], sizes = [16, 16], strides = [1, 1]} : vector<16x96xf32> to vector<16x16xf32>
    %242 = vector.extract_strided_slice %218 {offsets = [0, 48], sizes = [16, 16], strides = [1, 1]} : vector<16x96xf32> to vector<16x16xf32>
    %243 = vector.extract_strided_slice %218 {offsets = [0, 80], sizes = [16, 16], strides = [1, 1]} : vector<16x96xf32> to vector<16x16xf32>
    %cst_132 = arith.constant dense<0.000000e+00> : vector<16x16xf32>
    %244 = tpu.matmul %241, %242, %cst_132 {dimension_numbers = #tpu.dot_dimension_numbers<[1], [1], [0], [0], [0, 0, 1, 0], [], []>} : vector<16x16xf32>, vector<16x16xf32>, vector<16x16xf32> -> vector<16x16xf32>
    %cst_133 = arith.constant 2.500000e-01 : f32
    %245 = vector.broadcast %cst_133 : f32 to vector<16x16xf32>
    %246 = arith.mulf %244, %245 : vector<16x16xf32>
    %247 = arith.addf %246, %5 : vector<16x16xf32>
    %cst_134 = arith.constant dense<0xFF800000> : vector<16xf32>
    %248 = vector.multi_reduction <maximumf>, %247, %cst_134 [1] : vector<16x16xf32> to vector<16xf32>
    %249 = vector.shape_cast %248 : vector<16xf32> to vector<16x1xf32>
    %250 = vector.broadcast %249 : vector<16x1xf32> to vector<16x16xf32>
    %251 = arith.subf %247, %250 : vector<16x16xf32>
    %252 = math.exp %251 : vector<16x16xf32>
    %cst_135 = arith.constant dense<0.000000e+00> : vector<16xf32>
    %253 = vector.multi_reduction <add>, %252, %cst_135 [1] : vector<16x16xf32> to vector<16xf32>
    %254 = vector.shape_cast %253 : vector<16xf32> to vector<16x1xf32>
    %255 = tpu.reciprocal %254 {approx = true} : vector<16x1xf32> -> vector<16x1xf32>
    %256 = vector.broadcast %255 : vector<16x1xf32> to vector<16x16xf32>
    %257 = arith.mulf %252, %256 : vector<16x16xf32>
    %cst_136 = arith.constant dense<0.000000e+00> : vector<16x16xf32>
    %258 = tpu.matmul %257, %243, %cst_136 {dimension_numbers = #tpu.dot_dimension_numbers<[1], [0], [0], [1], [0, 0, 1, 1], [], []>} : vector<16x16xf32>, vector<16x16xf32>, vector<16x16xf32> -> vector<16x16xf32>
    %259 = vector.extract_strided_slice %179 {offsets = [16, 0], sizes = [16, 32], strides = [1, 1]} : vector<32x32xf32> to vector<16x32xf32>
    %cst_137 = arith.constant dense<0.000000e+00> : vector<16x32xf32>
    %260 = tpu.matmul %258, %259, %cst_137 {dimension_numbers = #tpu.dot_dimension_numbers<[1], [0], [0], [1], [0, 0, 1, 1], [], []>} : vector<16x16xf32>, vector<16x32xf32>, vector<16x32xf32> -> vector<16x32xf32>
    %261 = arith.addf %240, %260 : vector<16x32xf32>
    %262 = arith.addf %169, %261 : vector<16x32xf32>
    %263 = vector.broadcast %181 : vector<1x32xf32> to vector<16x32xf32>
    %264 = arith.addf %262, %263 : vector<16x32xf32>
    %cst_138 = arith.constant dense<0.000000e+00> : vector<16xf32>
    %265 = vector.multi_reduction <add>, %264, %cst_138 [1] : vector<16x32xf32> to vector<16xf32>
    %266 = vector.shape_cast %265 : vector<16xf32> to vector<16x1xf32>
    %cst_139 = arith.constant 3.200000e+01 : f32
    %267 = vector.broadcast %cst_139 : f32 to vector<16x1xf32>
    %268 = arith.divf %266, %267 : vector<16x1xf32>
    %269 = vector.broadcast %268 : vector<16x1xf32> to vector<16x32xf32>
    %270 = arith.subf %264, %269 : vector<16x32xf32>
    %271 = arith.mulf %270, %270 : vector<16x32xf32>
    %cst_140 = arith.constant dense<0.000000e+00> : vector<16xf32>
    %272 = vector.multi_reduction <add>, %271, %cst_140 [1] : vector<16x32xf32> to vector<16xf32>
    %273 = vector.shape_cast %272 : vector<16xf32> to vector<16x1xf32>
    %cst_141 = arith.constant 3.200000e+01 : f32
    %274 = vector.broadcast %cst_141 : f32 to vector<16x1xf32>
    %275 = arith.divf %273, %274 : vector<16x1xf32>
    %276 = vector.broadcast %268 : vector<16x1xf32> to vector<16x32xf32>
    %277 = arith.subf %264, %276 : vector<16x32xf32>
    %cst_142 = arith.constant 9.99999996E-13 : f32
    %278 = vector.broadcast %cst_142 : f32 to vector<16x1xf32>
    %279 = arith.addf %275, %278 : vector<16x1xf32>
    %280 = math.rsqrt %279 : vector<16x1xf32>
    %281 = vector.broadcast %280 : vector<16x1xf32> to vector<16x32xf32>
    %282 = arith.mulf %277, %281 : vector<16x32xf32>
    %283 = vector.broadcast %183 : vector<1x32xf32> to vector<16x32xf32>
    %284 = arith.mulf %282, %283 : vector<16x32xf32>
    %285 = vector.broadcast %185 : vector<1x32xf32> to vector<16x32xf32>
    %286 = arith.addf %284, %285 : vector<16x32xf32>
    %cst_143 = arith.constant dense<0.000000e+00> : vector<16x64xf32>
    %287 = tpu.matmul %286, %187, %cst_143 {dimension_numbers = #tpu.dot_dimension_numbers<[1], [0], [0], [1], [0, 0, 1, 1], [], []>} : vector<16x32xf32>, vector<32x64xf32>, vector<16x64xf32> -> vector<16x64xf32>
    %288 = vector.broadcast %189 : vector<1x64xf32> to vector<16x64xf32>
    %289 = arith.addf %287, %288 : vector<16x64xf32>
    %cst_144 = arith.constant 0.707106769 : f32
    %290 = vector.broadcast %cst_144 : f32 to vector<16x64xf32>
    %291 = arith.mulf %289, %290 : vector<16x64xf32>
    %292 = math.absf %291 : vector<16x64xf32>
    %cst_145 = arith.constant 0.327591091 : f32
    %293 = vector.broadcast %cst_145 : f32 to vector<16x64xf32>
    %294 = arith.mulf %293, %292 : vector<16x64xf32>
    %cst_146 = arith.constant 1.000000e+00 : f32
    %295 = vector.broadcast %cst_146 : f32 to vector<16x64xf32>
    %296 = arith.addf %295, %294 : vector<16x64xf32>
    %cst_147 = arith.constant 1.000000e+00 : f32
    %297 = vector.broadcast %cst_147 : f32 to vector<16x64xf32>
    %298 = arith.divf %297, %296 : vector<16x64xf32>
    %cst_148 = arith.constant 1.06140542 : f32
    %299 = vector.broadcast %cst_148 : f32 to vector<16x64xf32>
    %300 = arith.mulf %298, %299 : vector<16x64xf32>
    %cst_149 = arith.constant -1.45315206 : f32
    %301 = vector.broadcast %cst_149 : f32 to vector<16x64xf32>
    %302 = arith.addf %301, %300 : vector<16x64xf32>
    %303 = arith.mulf %298, %302 : vector<16x64xf32>
    %cst_150 = arith.constant 1.42141378 : f32
    %304 = vector.broadcast %cst_150 : f32 to vector<16x64xf32>
    %305 = arith.addf %304, %303 : vector<16x64xf32>
    %306 = arith.mulf %298, %305 : vector<16x64xf32>
    %cst_151 = arith.constant -0.284496725 : f32
    %307 = vector.broadcast %cst_151 : f32 to vector<16x64xf32>
    %308 = arith.addf %307, %306 : vector<16x64xf32>
    %309 = arith.mulf %298, %308 : vector<16x64xf32>
    %cst_152 = arith.constant 0.254829586 : f32
    %310 = vector.broadcast %cst_152 : f32 to vector<16x64xf32>
    %311 = arith.addf %310, %309 : vector<16x64xf32>
    %312 = arith.mulf %298, %311 : vector<16x64xf32>
    %cst_153 = arith.constant 0.000000e+00 : f32
    %313 = vector.broadcast %cst_153 : f32 to vector<16x64xf32>
    %314 = arith.subf %313, %292 : vector<16x64xf32>
    %315 = arith.mulf %314, %292 : vector<16x64xf32>
    %316 = math.exp %315 : vector<16x64xf32>
    %317 = arith.mulf %312, %316 : vector<16x64xf32>
    %cst_154 = arith.constant 1.000000e+00 : f32
    %318 = vector.broadcast %cst_154 : f32 to vector<16x64xf32>
    %319 = arith.subf %318, %317 : vector<16x64xf32>
    %cst_155 = arith.constant 0.000000e+00 : f32
    %320 = vector.broadcast %cst_155 : f32 to vector<16x64xf32>
    %321 = arith.cmpf olt, %291, %320 : vector<16x64xf32>
    %cst_156 = arith.constant 0.000000e+00 : f32
    %322 = vector.broadcast %cst_156 : f32 to vector<16x64xf32>
    %323 = arith.subf %322, %319 : vector<16x64xf32>
    %324 = arith.select %321, %323, %319 : vector<16x64xi1>, vector<16x64xf32>
    %cst_157 = arith.constant 5.000000e-01 : f32
    %325 = vector.broadcast %cst_157 : f32 to vector<16x64xf32>
    %326 = arith.mulf %325, %289 : vector<16x64xf32>
    %cst_158 = arith.constant 1.000000e+00 : f32
    %327 = vector.broadcast %cst_158 : f32 to vector<16x64xf32>
    %328 = arith.addf %327, %324 : vector<16x64xf32>
    %329 = arith.mulf %326, %328 : vector<16x64xf32>
    %cst_159 = arith.constant dense<0.000000e+00> : vector<16x32xf32>
    %330 = tpu.matmul %329, %191, %cst_159 {dimension_numbers = #tpu.dot_dimension_numbers<[1], [0], [0], [1], [0, 0, 1, 1], [], []>} : vector<16x64xf32>, vector<64x32xf32>, vector<16x32xf32> -> vector<16x32xf32>
    %331 = vector.broadcast %193 : vector<1x32xf32> to vector<16x32xf32>
    %332 = arith.addf %330, %331 : vector<16x32xf32>
    %333 = arith.addf %264, %332 : vector<16x32xf32>
    %334 = vector.extract_strided_slice %333 {offsets = [0, 0], sizes = [1, 32], strides = [1, 1]} : vector<16x32xf32> to vector<1x32xf32>
    %335 = vector.extract_strided_slice %333 {offsets = [8, 0], sizes = [1, 32], strides = [1, 1]} : vector<16x32xf32> to vector<1x32xf32>
    %336 = tpu.concatenate %334, %335 in 0 : vector<1x32xf32>, vector<1x32xf32> -> vector<2x32xf32>
    %c0_160 = arith.constant 0 : index
    %c0_161 = arith.constant 0 : index
    %337 = vector.load %arg16[%c0_160, %c0_161] : memref<1x32xf32, #tpu.memory_space<vmem>>, vector<1x32xf32>
    %c0_162 = arith.constant 0 : index
    %c0_163 = arith.constant 0 : index
    %338 = vector.load %arg17[%c0_162, %c0_163] : memref<1x32xf32, #tpu.memory_space<vmem>>, vector<1x32xf32>
    %cst_164 = arith.constant dense<0.000000e+00> : vector<2xf32>
    %339 = vector.multi_reduction <add>, %336, %cst_164 [1] : vector<2x32xf32> to vector<2xf32>
    %340 = vector.shape_cast %339 : vector<2xf32> to vector<2x1xf32>
    %cst_165 = arith.constant 3.200000e+01 : f32
    %341 = vector.broadcast %cst_165 : f32 to vector<2x1xf32>
    %342 = arith.divf %340, %341 : vector<2x1xf32>
    %343 = vector.broadcast %342 : vector<2x1xf32> to vector<2x32xf32>
    %344 = arith.subf %336, %343 : vector<2x32xf32>
    %345 = arith.mulf %344, %344 : vector<2x32xf32>
    %cst_166 = arith.constant dense<0.000000e+00> : vector<2xf32>
    %346 = vector.multi_reduction <add>, %345, %cst_166 [1] : vector<2x32xf32> to vector<2xf32>
    %347 = vector.shape_cast %346 : vector<2xf32> to vector<2x1xf32>
    %cst_167 = arith.constant 3.200000e+01 : f32
    %348 = vector.broadcast %cst_167 : f32 to vector<2x1xf32>
    %349 = arith.divf %347, %348 : vector<2x1xf32>
    %350 = vector.broadcast %342 : vector<2x1xf32> to vector<2x32xf32>
    %351 = arith.subf %336, %350 : vector<2x32xf32>
    %cst_168 = arith.constant 9.99999996E-13 : f32
    %352 = vector.broadcast %cst_168 : f32 to vector<2x1xf32>
    %353 = arith.addf %349, %352 : vector<2x1xf32>
    %354 = math.rsqrt %353 : vector<2x1xf32>
    %355 = vector.broadcast %354 : vector<2x1xf32> to vector<2x32xf32>
    %356 = arith.mulf %351, %355 : vector<2x32xf32>
    %357 = vector.broadcast %337 : vector<1x32xf32> to vector<2x32xf32>
    %358 = arith.mulf %356, %357 : vector<2x32xf32>
    %359 = vector.broadcast %338 : vector<1x32xf32> to vector<2x32xf32>
    %360 = arith.addf %358, %359 : vector<2x32xf32>
    %c0_169 = arith.constant 0 : index
    %c0_170 = arith.constant 0 : index
    %361 = vector.load %arg18[%c0_169, %c0_170] : memref<2x32xf32, #tpu.memory_space<vmem>>, vector<2x32xf32>
    tpu.vector_store %arg18[%c0_169, %c0_170], %360 {strides = array<i32>} : memref<2x32xf32, #tpu.memory_space<vmem>>, vector<2x32xf32>,
    return
  }
}

</mosaic_0001>

<bundles_post_ra>
// kernel: tpu_custom_call.1
= control target key start
LH: loop header
LB: loop body
LE: loop exit
PB: predicated region body
PF: predicated region fallthrough
CT: control target
= control target key end

     0   :  { %s3455_s0 = inlined_call_operand.vmem [shape: f32[16,192], index: 0, kind: input, shape index: {}]   ;;  %s3456_s1 = inlined_call_operand.vmem [shape: f32[16,32], index: 1, kind: input, shape index: {}]   ;;  %s3457_s2 = inlined_call_operand.vmem [shape: f32[16,16], index: 2, kind: input, shape index: {}]   ;;  %s3458_s3 = inlined_call_operand.vmem [shape: f32[192,32], index: 3, kind: input, shape index: {}]   ;;  %s3459_s4 = inlined_call_operand.vmem [shape: f32[2,32,96], index: 4, kind: input, shape index: {}]   ;;  %s3460_s5 = inlined_call_operand.vmem [shape: f32[2,1,96], index: 5, kind: input, shape index: {}]   ;;  %s3461_s6 = inlined_call_operand.vmem [shape: f32[2,32,32], index: 6, kind: input, shape index: {}]   ;;  %s3462_s7 = inlined_call_operand.vmem [shape: f32[2,1,32], index: 7, kind: input, shape index: {}]   ;;  %s3463_s8 = inlined_call_operand.vmem [shape: f32[2,1,32], index: 8, kind: input, shape index: {}]   ;;  %s3464_s9 = inlined_call_operand.vmem [shape: f32[2,1,32], index: 9, kind: input, shape index: {}]   ;;  %s3465_s10 = inlined_call_operand.vmem [shape: f32[2,32,64], index: 10, kind: input, shape index: {}]   ;;  %s3466_s11 = inlined_call_operand.vmem [shape: f32[2,1,64], index: 11, kind: input, shape index: {}]   ;;  %s3467_s12 = inlined_call_operand.vmem [shape: f32[2,64,32], index: 12, kind: input, shape index: {}]   ;;  %s3468_s13 = inlined_call_operand.vmem [shape: f32[2,1,32], index: 13, kind: input, shape index: {}]   ;;  %s3469_s14 = inlined_call_operand.vmem [shape: f32[2,1,32], index: 14, kind: input, shape index: {}]   ;;  %s3470_s15 = inlined_call_operand.vmem [shape: f32[2,1,32], index: 15, kind: input, shape index: {}]   ;;  %s3471_s16 = inlined_call_operand.vmem [shape: f32[1,32], index: 16, kind: input, shape index: {}]   ;;  %s3472_s17 = inlined_call_operand.vmem [shape: f32[1,32], index: 17, kind: input, shape index: {}]   ;;  %s3473_s18 = inlined_call_operand.hbm [shape: f32[2,32], index: 18, kind: output, shape index: {}]  }
   0x1   :  { %3477 = sst [smem:[#allocation5_spill]] %s3455_s0 }
   0x2   :  { %3478 = sst [smem:[#allocation6_spill]] %s3456_s1 }
   0x3   :  { %3479 = sst [smem:[#allocation7_spill]] %s3457_s2 }
   0x4   :  { %v64_v0 = vld [vmem:[%s3458_s3] sm:$0xff]  ;;  %v65_v1 = vld [vmem:[%s3458_s3 + $0x8] sm:$0xff]  ;;  %v66_v2 = vld [vmem:[%s3458_s3 + $0x10] sm:$0xff]  ;;  %v2900_v3 = vmov 0.0|0.0   ;;  %vm90_vm0 = vcmask 523264   ;;  %s3480_s30 = sld [smem:[#allocation5_spill]] }
   0x5   :  { %2603 = vmatprep.subr.bf16.mxu0 %v2900_v3  ;;  %v2604_v4 = vpack.c.bf16 %v65_v1, %v64_v0  ;;  %v67_v5 = vld [vmem:[%s3458_s3 + $0x18] sm:$0xff]  ;;  %v68_v7 = vld [vmem:[%s3458_s3 + $0x20] sm:$0xff]  ;;  %v69_v8 = vld [vmem:[%s3458_s3 + $0x28] sm:$0xff] }
   0x6   :  { %v2607_v6 = vpack.c.bf16 %v67_v5, %v66_v2  ;;  %v2610_v9 = vpack.c.bf16 %v69_v8, %v68_v7  ;;  %v70_v10 = vld [vmem:[%s3458_s3 + $0x30] sm:$0xff]  ;;  %v71_v11 = vld [vmem:[%s3458_s3 + $0x38] sm:$0xff] }
   0x7   :  { %2605 = vmatpush1.bf16.msra.mxu0 %v2604_v4 }
   0x8   :  { %2606 = vmatprep.subr.bf16.mxu0 %v2900_v3 }
   0xa   :  { %v61_v12 = vld [vmem:[%s3480_s30 + $0x8] sm:$0xff] }
   0xb   :  { %2608 = vmatpush1.bf16.msra.mxu0 %v2607_v6  ;;  %2253 = vmatprep.mubr.msk.f32.mxu0 %vm90_vm0, %v61_v12 }
   0xc   :  { %2609 = vmatprep.subr.bf16.mxu0 %v2900_v3 }
   0xd   :  { %23 = vsyncpa [#allocation3], 0  ;;  %v2613_v13 = vpack.c.bf16 %v71_v11, %v70_v10  ;;  %v72_v14 = vld [vmem:[%s3458_s3 + $0x40] sm:$0xff]  ;;  %v73_v15 = vld [vmem:[%s3458_s3 + $0x48] sm:$0xff]  ;;  %s3481_s27 = sld [smem:[#allocation6_spill]]  ;;  %vm202_vm1 = vcmask 261120  }
   0xe   :  { %v2616_v16 = vpack.c.bf16 %v73_v15, %v72_v14  ;;  %v74_v17 = vld [vmem:[%s3458_s3 + $0x50] sm:$0xff]  ;;  %v75_v18 = vld [vmem:[%s3458_s3 + $0x58] sm:$0xff]  ;;  %v76_v20 = vld [vmem:[%s3458_s3 + $0x60] sm:$0xff]  ;;  %vm339_vm2 = vcmask 130048   ;;  %s2901_s28 = smov 96   ;;  %s2902_s29 = smov 80  }
   0xf   :  { %2611 = vmatpush1.bf16.msra.mxu0 %v2610_v9  ;;  %v2619_v19 = vpack.c.bf16 %v75_v18, %v74_v17  ;;  %v77_v21 = vld [vmem:[%s3458_s3 + $0x68] sm:$0xff]  ;;  %v78_v23 = vld [vmem:[%s3458_s3 + $0x70] sm:$0xff]  ;;  %v79_v24 = vld [vmem:[%s3458_s3 + $0x78] sm:$0xff]  ;;  %s3484_s1 = sld [smem:[#allocation7_spill]]  ;;  %s2904_s22 = smov 64   ;;  %vm2206_vm8 = vcmask 1040384  }
  0x10   :  { %2612 = vmatprep.subr.bf16.mxu0 %v2900_v3  ;;  %v2622_v22 = vpack.c.bf16 %v77_v21, %v76_v20  ;;  %v2625_v25 = vpack.c.bf16 %v79_v24, %v78_v23  ;;  %v80_v26 = vld [vmem:[%s3458_s3 + $0x80] sm:$0xff]  ;;  %v81_v27 = vld [vmem:[%s3458_s3 + $0x88] sm:$0xff]  ;;  %v82_v29 = vld [vmem:[%s3458_s3 + $0x90] sm:$0xff]  ;;  %s2905_s2 = smov 48   ;;  %vm2210_vm9 = vcmask 254976  }
  0x11   :  { %v2628_v28 = vpack.c.bf16 %v81_v27, %v80_v26  ;;  %v83_v30 = vld [vmem:[%s3458_s3 + $0x98] sm:$0xff]  ;;  %v84_v32 = vld [vmem:[%s3458_s3 + $0xa0] sm:$0xff]  ;;  %v85_v33 = vld [vmem:[%s3458_s3 + $0xa8] sm:$0xff] }
  0x12   :  { %v2631_v31 = vpack.c.bf16 %v83_v30, %v82_v29  ;;  %v2634_v34 = vpack.c.bf16 %v85_v33, %v84_v32  ;;  %v86_v35 = vld [vmem:[%s3458_s3 + $0xb0] sm:$0xff]  ;;  %v87_v36 = vld [vmem:[%s3458_s3 + $0xb8] sm:$0xff]  ;;  %v60_v38 = vld [vmem:[%s3480_s30] sm:$0xff] }
  0x13   :  { %2614 = vmatpush1.bf16.msra.mxu0 %v2613_v13  ;;  %v2637_v37 = vpack.c.bf16 %v87_v36, %v86_v35  ;;  %v63_v39 = vld [vmem:[%s3480_s30 + $0x18] sm:$0xff]  ;;  %v62_v40 = vld [vmem:[%s3480_s30 + $0x10] sm:$0xff]  ;;  %v88_v41 = vld [vmem:[%s3481_s27] sm:$0xff]  ;;  %s2903_s30 = smov 112  }
  0x14   :  { %2615 = vmatprep.subr.bf16.mxu0 %v2900_v3  ;;  %v89_v45 = vld [vmem:[%s3481_s27 + $0x8] sm:$0xff]  ;;  %v176_v61 = vld [vmem:[%s3459_s4] sm:$0xff]  ;;  %v178_v63 = vld [vmem:[%s3459_s4 + $0x10] sm:$0xff] }
  0x15   :  { %v177_v62 = vld [vmem:[%s3459_s4 + $0x8] sm:$0xff]  ;;  %v179_v1 = vld [vmem:[%s3459_s4 + $0x18] sm:$0xff]  ;;  %v2255_v10 = vld [vmem:[%s3463_s8] ss:$0 sm:$0xff] }
  0x16   :  { %v2639_v0 = vpack.c.bf16 %v177_v62, %v176_v61  ;;  %v2643_v2 = vpack.c.bf16 %v179_v1, %v178_v63  ;;  %v2256_v12 = vld [vmem:[%s3464_s9] ss:$0 sm:$0xff]  ;;  %vm3140_vm3 = vmpackc.low %vm339_vm2, %vm339_vm2  ;;  %v3157_v35 = vld [vmem:[%s3484_s1 + $0x8] sm:$0xff] }
  0x17   :  { %2617 = vmatpush1.bf16.msra.mxu0 %v2616_v16  ;;  %v3152_v32 = vld [vmem:[%s3484_s1] sm:$0xff]  ;;  %s2906_s1 = smov [#allocation2]  }
  0x18   :  { %2618 = vmatprep.subr.bf16.mxu0 %v2900_v3  ;;  %2640 = vmatprep.subr.bf16.mxu1 %v2639_v0  ;;  %s2245_s20 = sshll.u32 %s2906_s1, 4  ;;  %s2246_s20 = int_to_ptr.vmem [resolvable:$true] %s2245_s20 }
  0x19   :  { %2642 = vmatpush3.bf16.msra.mxu1 %v2639_v0  ;;  %p2881_p1 = scmp.lt.s32.totalorder %s2246_s20, %s2246_s20 }
  0x1a   :  { %2644 = vmatprep.subr.bf16.mxu1 %v2643_v2 }
  0x1b   :  { %2620 = vmatpush1.bf16.msra.mxu0 %v2619_v19  ;;  %v2257_v19 = vld [vmem:[%s3460_s5] ss:$0 sm:$0xff] }
  0x1c   :  { %2621 = vmatprep.subr.bf16.mxu0 %v2900_v3 }
  0x1d   :  { %2646 = vmatpush3.bf16.msra.mxu1 %v2643_v2 }
  0x1f   :  { %2623 = vmatpush1.bf16.msra.mxu0 %v2622_v22 }
  0x20   :  { %2624 = vmatprep.subr.bf16.mxu0 %v2900_v3 }
  0x23   :  { %2626 = vmatpush1.bf16.msra.mxu0 %v2625_v25 }
  0x24   :  { %2627 = vmatprep.subr.bf16.mxu0 %v2900_v3 }
  0x27   :  { %2629 = vmatpush1.bf16.msra.mxu0 %v2628_v28 }
  0x28   :  { %2630 = vmatprep.subr.bf16.mxu0 %v2900_v3 }
  0x2b   :  { %2632 = vmatpush1.bf16.msra.mxu0 %v2631_v31 }
  0x2c   :  { %2633 = vmatprep.subr.bf16.mxu0 %v2900_v3 }
  0x2f   :  { %2635 = vmatpush1.bf16.msra.mxu0 %v2634_v34 }
  0x30   :  { %2636 = vmatprep.subr.bf16.mxu0 %v2900_v3 }
  0x33   :  { %2638 = vmatpush1.bf16.msra.mxu0 %v2637_v37 }
  0x36   :  { %162 = vmatmul.mubr.f32.vlgmr.msra.gmra.mrb[0].mxu0 %v60_v38 }
  0x37   :  { %2254 = vmatprep.mubr.msk.f32.mxu0 %vm90_vm0, %v63_v39 }
  0x3a   :  { %167 = vmatmul.mubr.f32.gmra.mrb[2].mxu0 %v62_v40 }
 0x109   :  { %v163_v42 = vpop.f32.mrb[0].mxu0 }
 0x10a   :  { %v3091_v43 = vadd.f32 %v163_v42, %v88_v41  ;;  %v165_v44 = vpop.f32.mrb[1].mxu0 }
 0x10c   :  { %v203_v46 = vsel %vm202_vm1, %v3091_v43, 0.0 }
 0x10d   :  { %v168_v47 = vpop.f32.mrb[2].mxu0  ;;  %204 = vadd.xlane.f32.xlu0 %v203_v46 }
 0x10e   :  { %v3098_v48 = vadd.f32 %v168_v47, %v89_v45  ;;  %v170_v49 = vpop.f32.mrb[3].mxu0 }
 0x110   :  { %v206_v50 = vsel %vm202_vm1, %v3098_v48, 0.0 }
 0x111   :  { %207 = vadd.xlane.f32.xlu0 %v206_v50 }
 0x19a   :  { %v205_v51 = vpop.xlane.xlu0 %204 }
 0x19b   :  { %v210_v52 = vmul.f32 0.03125, %v205_v51 }
 0x19d   :  { %v212_v53 = vsub.f32 %v3091_v43, %v210_v52 }
 0x19e   :  { %v208_v54 = vpop.xlane.xlu0 %207 }
 0x19f   :  { %v211_v55 = vmul.f32 0.03125, %v208_v54  ;;  %v214_v56 = vmul.f32 %v212_v53, %v212_v53 }
 0x1a1   :  { %v213_v57 = vsub.f32 %v3098_v48, %v211_v55  ;;  %v216_v58 = vsel %vm202_vm1, %v214_v56, 0.0 }
 0x1a2   :  { %217 = vadd.xlane.f32.xlu1 %v216_v58 }
 0x1a3   :  { %v215_v59 = vmul.f32 %v213_v57, %v213_v57 }
 0x1a5   :  { %v219_v60 = vsel %vm202_vm1, %v215_v59, 0.0 }
 0x1a6   :  { %220 = vadd.xlane.f32.xlu1 %v219_v60 }
 0x22f   :  { %v218_v3 = vpop.xlane.xlu1 %217 }
 0x230   :  { %v222_v4 = vmul.f32 0.03125, %v218_v3 }
 0x232   :  { %v224_v5 = vadd.f32 1e-12, %v222_v4 }
 0x233   :  { %v221_v6 = vpop.xlane.xlu1 %220 }
 0x234   :  { %2810 = vrsqrt.f32 %v224_v5  ;;  %v223_v7 = vmul.f32 0.03125, %v221_v6 }
 0x236   :  { %v225_v8 = vadd.f32 1e-12, %v223_v7 }
 0x238   :  { %2812 = vrsqrt.f32 %v225_v8 }
 0x23e   :  { %v2811_v9 = vpop.eup %2810 }
 0x23f   :  { %v228_v11 = vmul.f32 %v2811_v9, %v212_v53 }
 0x241   :  { %v236_v13 = vmul.f32 %v2255_v10, %v228_v11 }
 0x242   :  { %v2813_v14 = vpop.eup %2812 }
 0x243   :  { %v229_v15 = vmul.f32 %v2813_v14, %v213_v57  ;;  %v244_v16 = vadd.f32 %v2256_v12, %v236_v13 }
 0x245   :  { %v237_v17 = vmul.f32 %v2255_v10, %v229_v15  ;;  %2445 = vmatprep.mubr.msk.f32.mxu1 %vm202_vm1, %v244_v16 }
 0x247   :  { %v245_v18 = vadd.f32 %v2256_v12, %v237_v17 }
 0x249   :  { %2446 = vmatmul.mubr.msk.f32.vlgmr.msra.gmra.mrb[0].mxu1 %vm202_vm1, %v245_v18 }
 0x31c   :  { %v2447_v20 = vpop.f32.mrb[0].mxu1 }
 0x31d   :  { %v330_v21 = vadd.f32 %v2447_v20, %v2257_v19  ;;  %v324_v22 = vpop.f32.mrb[1].mxu1 }
 0x31e   :  { %v325_v23 = vadd.f32 %v2257_v19, %v324_v22 }
 0x320   :  { %2452 = vmatprep.mubr.msk.f32.mxu1 %vm339_vm2, %v325_v23  ;;  %v3130_v24 = vpack.i.bf16 %v330_v21, %v325_v23 }
 0x322   :  { %2771 = vrot.lane.b32.xlu0 %v3130_v24, %s2901_s28 }
 0x326   :  { %2781 = vrot.lane.b32.xlu0 %v3130_v24, %s2902_s29 }
 0x32a   :  { %536 = vrot.lane.b32.xlu0 %v325_v23, %s2903_s30 }
 0x32e   :  { %538 = vrot.lane.b32.xlu0 %v330_v21, %s2903_s30 }
 0x394   :  { %v2772_v25 = vpop.permute.xlu0 %2771 }
 0x395   :  { %v2774_v26 = vunpack.i.h.bf16 %v2772_v25  ;;  %v2773_v27 = vunpack.i.l.bf16 %v2772_v25 }
 0x397   :  { %v2647_v29 = vpack.c.bf16 %v2774_v26, %v2773_v27 }
 0x398   :  { %v2782_v54 = vpop.permute.xlu0 %2781 }
 0x399   :  { %2649 = vmatprep.subr.msk.bf16.mxu1 %vm3140_vm3, %v2647_v29  ;;  %v2784_v56 = vunpack.i.h.bf16 %v2782_v54  ;;  %v2783_v57 = vunpack.i.l.bf16 %v2782_v54 }
 0x39a   :  { %2652 = vmatpush3.bf16.xpose.msk.msra.mxu1 %vm3140_vm3, %v2647_v29  ;;  %v183_v29 = vld [vmem:[%s3461_s6 + $0x10] sm:$0xff] }
 0x39b   :  { %v2657_v61 = vpack.c.bf16 %v2784_v56, %v2783_v57 }
 0x39c   :  { %v537_v2 = vpop.permute.xlu0 %536 }
 0x3a0   :  { %v539_v3 = vpop.permute.xlu0 %538 }
 0x3a1   :  { %2453 = vmatmul.mubr.msk.f32.vlgmr.msra.gmra.mrb[2].mxu1 %vm339_vm2, %v330_v21 }
 0x474   :  { %v2454_v30 = vpop.f32.mrb[2].mxu1 }
 0x475   :  { %v414_v31 = vpop.f32.mrb[3].mxu1  ;;  %v424_v33 = vmul.f32 0.25, %v2454_v30  ;;  %v184_v30 = vld [vmem:[%s3461_s6 + $0x18] sm:$0xff] }
 0x476   :  { %v423_v34 = vmul.f32 0.25, %v414_v31  ;;  %v2667_v31 = vpack.c.bf16 %v184_v30, %v183_v29  ;;  %v197_v29 = vld [vmem:[%s3467_s12 + $0x20] sm:$0xff]  ;;  %v198_v30 = vld [vmem:[%s3467_s12 + $0x28] sm:$0xff] }
 0x477   :  { %v426_v38 = vadd.f32 %v424_v33, %v3157_v35 }
 0x478   :  { %v425_v36 = vadd.f32 %v423_v34, %v3152_v32 }
 0x479   :  { %v430_v39 = vsel %vm339_vm2, %v426_v38, -inf }
 0x47a   :  { %v427_v37 = vsel %vm339_vm2, %v425_v36, -inf }
 0x47b   :  { %428 = vmax.xlane.f32.xlu1 %v427_v37 }
 0x47f   :  { %431 = vmax.xlane.f32.xlu1 %v430_v39 }
 0x508   :  { %v429_v40 = vpop.xlane.xlu1 %428 }
 0x509   :  { %v433_v41 = vsub.f32 %v425_v36, %v429_v40  ;;  %v181_v40 = vld [vmem:[%s3461_s6] sm:$0xff] }
 0x50b   :  { %v435_v45 = vmul.f32 1.442695, %v433_v41  ;;  %v182_v41 = vld [vmem:[%s3461_s6 + $0x8] sm:$0xff] }
 0x50c   :  { %v432_v42 = vpop.xlane.xlu1 %431 }
 0x50d   :  { %v434_v44 = vsub.f32 %v426_v38, %v432_v42  ;;  %v2671_v42 = vpack.c.bf16 %v182_v41, %v181_v40 }
 0x50f   :  { %v437_v46 = vmul.f32 1.442695, %v434_v44 }
 0x511   :  { %2814 = vpow2.f32 %v437_v46 }
 0x512   :  { %2816 = vpow2.f32 %v435_v45 }
 0x51b   :  { %v2815_v47 = vpop.eup %2814 }
 0x51c   :  { %v442_v49 = vsel %vm339_vm2, %v2815_v47, 0.0  ;;  %v2817_v50 = vpop.eup %2816 }
 0x51d   :  { %443 = vadd.xlane.f32.xlu1 %v442_v49  ;;  %v439_v51 = vsel %vm339_vm2, %v2817_v50, 0.0 }
 0x521   :  { %440 = vadd.xlane.f32.xlu1 %v439_v51 }
 0x532   :  { %2776 = vrot.lane.b32.xlu1 %v3130_v24, %s2904_s22 }
 0x5aa   :  { %v444_v52 = vpop.xlane.xlu1 %443 }
 0x5ab   :  { %2818 = vrcp.f32 %v444_v52 }
 0x5ae   :  { %v441_v53 = vpop.xlane.xlu1 %440 }
 0x5af   :  { %2820 = vrcp.f32 %v441_v53 }
 0x5b2   :  { %v2777_v55 = vpop.permute.xlu1 %2776 }
 0x5b3   :  { %v2779_v58 = vunpack.i.h.bf16 %v2777_v55  ;;  %v2778_v59 = vunpack.i.l.bf16 %v2777_v55 }
 0x5b5   :  { %v2653_v60 = vpack.c.bf16 %v2779_v58, %v2778_v59  ;;  %v2819_v62 = vpop.eup %2818 }
 0x5b6   :  { %v448_v1 = vmul.f32 %v2819_v62, %v2815_v47  ;;  %v2276_v47 = vld [vmem:[%s3462_s7] ss:$0 sm:$0xff] }
 0x5b7   :  { %2654 = vmatprep.subr.bf16.mxu1 %v2653_v60 }
 0x5b8   :  { %2656 = vmatpush3.bf16.msra.mxu1 %v2653_v60 }
 0x5b9   :  { %v2821_v63 = vpop.eup %2820  ;;  %2659 = vmatprep.subr.msk.bf16.mxu1 %vm3140_vm3, %v2657_v61 }
 0x5ba   :  { %v447_v0 = vmul.f32 %v2821_v63, %v2817_v50 }
 0x5bc   :  { %2459 = vmatprep.mubr.msk.f32.mxu1 %vm339_vm2, %v447_v0  ;;  %v188_v0 = vld [vmem:[%s3465_s10] sm:$0xff] }
 0x5bd   :  { %2460 = vmatmul.mubr.msk.f32.vlgmr.msra.gmra.mrb[4].mxu1 %vm339_vm2, %v448_v1  ;;  %v189_v1 = vld [vmem:[%s3465_s10 + $0x8] sm:$0xff] }
 0x5be   :  { %2466 = vmatprep.mubr.msk.f32.mxu1 %vm339_vm2, %v537_v2  ;;  %v2675_v2 = vpack.c.bf16 %v189_v1, %v188_v0 }
 0x5c1   :  { %2662 = vmatpush3.bf16.xpose.msk.msra.mxu1 %vm3140_vm3, %v2657_v61 }
 0x5c8   :  { %2467 = vmatmul.mubr.msk.f32.vlgmr.msra.gmra.mrb[6].mxu1 %vm339_vm2, %v539_v3  ;;  %v190_v3 = vld [vmem:[%s3465_s10 + $0x10] sm:$0xff] }
 0x690   :  { %v2461_v4 = vpop.f32.mrb[4].mxu1 }
 0x691   :  { %v527_v5 = vpop.f32.mrb[5].mxu1 }
 0x69b   :  { %v2468_v6 = vpop.f32.mrb[6].mxu1 }
 0x69c   :  { %v628_v7 = vmul.f32 0.25, %v2468_v6  ;;  %v618_v8 = vpop.f32.mrb[7].mxu1 }
 0x69d   :  { %v627_v9 = vmul.f32 0.25, %v618_v8 }
 0x69e   :  { %v630_v10 = vadd.f32 %v628_v7, %v3157_v35 }
 0x69f   :  { %v629_v11 = vadd.f32 %v627_v9, %v3152_v32 }
 0x6a0   :  { %v634_v12 = vsel %vm339_vm2, %v630_v10, -inf }
 0x6a1   :  { %635 = vmax.xlane.f32.xlu0 %v634_v12  ;;  %v631_v13 = vsel %vm339_vm2, %v629_v11, -inf }
 0x6a2   :  { %632 = vmax.xlane.f32.xlu1 %v631_v13  ;;  %v2277_v13 = vld [vmem:[%s3469_s14] ss:$0 sm:$0xff] }
 0x6b3   :  { %2786 = vrot.lane.b32.xlu1 %v3130_v24, %s2905_s2 }
 0x72e   :  { %v636_v14 = vpop.xlane.xlu0 %635 }
 0x72f   :  { %v638_v15 = vsub.f32 %v630_v10, %v636_v14  ;;  %v633_v16 = vpop.xlane.xlu1 %632 }
 0x730   :  { %v637_v17 = vsub.f32 %v629_v11, %v633_v16 }
 0x731   :  { %v641_v18 = vmul.f32 1.442695, %v638_v15  ;;  %v2278_v15 = vld [vmem:[%s3470_s15] ss:$0 sm:$0xff] }
 0x732   :  { %v639_v19 = vmul.f32 1.442695, %v637_v17 }
 0x733   :  { %v2787_v20 = vpop.permute.xlu1 %2786 }
 0x734   :  { %2822 = vpow2.f32 %v639_v19  ;;  %v2789_v21 = vunpack.i.h.bf16 %v2787_v20  ;;  %v2788_v22 = vunpack.i.l.bf16 %v2787_v20 }
 0x735   :  { %2824 = vpow2.f32 %v641_v18 }
 0x736   :  { %v2663_v23 = vpack.c.bf16 %v2789_v21, %v2788_v22  ;;  %v193_v22 = vld [vmem:[%s3467_s12] sm:$0xff] }
 0x738   :  { %2664 = vmatprep.subr.bf16.mxu1 %v2663_v23 }
 0x739   :  { %2666 = vmatpush3.bf16.msra.mxu1 %v2663_v23  ;;  %v194_v23 = vld [vmem:[%s3467_s12 + $0x8] sm:$0xff] }
 0x73a   :  { %2668 = vmatprep.subr.bf16.mxu1 %v2667_v31 }
 0x73e   :  { %v2823_v25 = vpop.eup %2822 }
 0x73f   :  { %v643_v26 = vsel %vm339_vm2, %v2823_v25, 0.0  ;;  %v2825_v27 = vpop.eup %2824 }
 0x740   :  { %644 = vadd.xlane.f32.xlu0 %v643_v26  ;;  %v646_v24 = vsel %vm339_vm2, %v2825_v27, 0.0  ;;  %v195_v26 = vld [vmem:[%s3467_s12 + $0x10] sm:$0xff] }
 0x744   :  { %647 = vadd.xlane.f32.xlu0 %v646_v24 }
 0x7cd   :  { %v645_v33 = vpop.xlane.xlu0 %644 }
 0x7ce   :  { %2826 = vrcp.f32 %v645_v33  ;;  %v199_v33 = vld [vmem:[%s3467_s12 + $0x30] sm:$0xff] }
 0x7d1   :  { %v648_v34 = vpop.xlane.xlu0 %647 }
 0x7d2   :  { %2828 = vrcp.f32 %v648_v34  ;;  %v200_v34 = vld [vmem:[%s3467_s12 + $0x38] sm:$0xff] }
 0x7d8   :  { %v2827_v36 = vpop.eup %2826 }
 0x7d9   :  { %v651_v37 = vmul.f32 %v2827_v36, %v2823_v25  ;;  %v2683_v25 = vpack.c.bf16 %v194_v23, %v193_v22  ;;  %v2695_v36 = vpack.c.bf16 %v200_v34, %v199_v33 }
 0x7db   :  { %2473 = vmatprep.mubr.msk.f32.mxu1 %vm339_vm2, %v651_v37  ;;  %2684 = vmatprep.subr.bf16.mxu0 %v2683_v25  ;;  %v2279_v37 = vld [vmem:[%s3466_s11] ss:$0 sm:$0xff] }
 0x7dc   :  { %v2829_v38 = vpop.eup %2828  ;;  %2686 = vmatpush3.bf16.msra.mxu0 %v2683_v25 }
 0x7dd   :  { %v652_v39 = vmul.f32 %v2829_v38, %v2825_v27  ;;  %v196_v27 = vld [vmem:[%s3467_s12 + $0x18] sm:$0xff] }
 0x7de   :  { %v2687_v24 = vpack.c.bf16 %v196_v27, %v195_v26 }
 0x7df   :  { %2474 = vmatmul.mubr.msk.f32.vlgmr.msra.gmra.mrb[8].mxu1 %vm339_vm2, %v652_v39 }
 0x7e0   :  { %2670 = vmatpush3.bf16.msra.mxu1 %v2667_v31  ;;  %2688 = vmatprep.subr.bf16.mxu0 %v2687_v24  ;;  %v2691_v31 = vpack.c.bf16 %v198_v30, %v197_v29 }
 0x7e1   :  { %2672 = vmatprep.subr.bf16.mxu1 %v2671_v42  ;;  %2690 = vmatpush3.bf16.msra.mxu0 %v2687_v24 }
 0x7e2   :  { %2692 = vmatprep.subr.bf16.mxu0 %v2691_v31 }
 0x7e5   :  { %2694 = vmatpush3.bf16.msra.mxu0 %v2691_v31  ;;  %v2282_v31 = vld [vmem:[%s3468_s13] ss:$0 sm:$0xff] }
 0x7e6   :  { %2696 = vmatprep.subr.bf16.mxu0 %v2695_v36 }
 0x7e9   :  { %2698 = vmatpush3.bf16.msra.mxu0 %v2695_v36 }
 0x8b2   :  { %v2475_v44 = vpop.f32.mrb[8].mxu1 }
 0x8b3   :  { %v731_v45 = vpop.f32.mrb[9].mxu1 }
 0x8b4   :  { %2480 = vmatprep.mubr.msk.f32.mxu1 %vm339_vm2, %v731_v45 }
 0x8b5   :  { %2481 = vmatmul.mubr.msk.f32.vlgmr.msra.gmra.mrb[10].mxu1 %vm339_vm2, %v2475_v44 }
 0x8b6   :  { %2674 = vmatpush3.bf16.msra.mxu1 %v2671_v42  ;;  %2487 = vmatprep.mubr.msk.f32.mxu1 %vm339_vm2, %v527_v5 }
 0x8b7   :  { %2676 = vmatprep.subr.bf16.mxu1 %v2675_v2 }
 0x8bd   :  { %2488 = vmatmul.mubr.msk.f32.vlgmr.msra.gmra.mrb[10].mxu1 %vm339_vm2, %v2461_v4  ;;  %v191_v4 = vld [vmem:[%s3465_s10 + $0x18] sm:$0xff] }
 0x8be   :  { %2678 = vmatpush3.bf16.msra.mxu1 %v2675_v2  ;;  %v2679_v5 = vpack.c.bf16 %v191_v4, %v190_v3 }
 0x8c0   :  { %2680 = vmatprep.subr.bf16.mxu1 %v2679_v5 }
 0x8c2   :  { %2682 = vmatpush3.bf16.msra.mxu1 %v2679_v5 }
 0x990   :  { %v2489_v46 = vpop.f32.mrb[10].mxu1 }
 0x991   :  { %v893_v49 = vpop.f32.mrb[11].mxu1  ;;  %v903_v50 = vadd.f32 %v2489_v46, %v3098_v48 }
 0x992   :  { %v902_v51 = vadd.f32 %v893_v49, %v3091_v43 }
 0x993   :  { %v3208_v53 = vadd.f32 %v2276_v47, %v903_v50 }
 0x994   :  { %v3206_v52 = vadd.f32 %v2276_v47, %v902_v51 }
 0x995   :  { %v915_v55 = vsel %vm202_vm1, %v3208_v53, 0.0 }
 0x996   :  { %v912_v54 = vsel %vm202_vm1, %v3206_v52, 0.0 }
 0x997   :  { %913 = vadd.xlane.f32.xlu0 %v912_v54 }
 0x99b   :  { %916 = vadd.xlane.f32.xlu0 %v915_v55 }
 0xa24   :  { %v914_v56 = vpop.xlane.xlu0 %913 }
 0xa25   :  { %v918_v57 = vmul.f32 0.03125, %v914_v56 }
 0xa27   :  { %v920_v58 = vsub.f32 %v3206_v52, %v918_v57 }
 0xa28   :  { %v917_v59 = vpop.xlane.xlu0 %916 }
 0xa29   :  { %v919_v48 = vmul.f32 0.03125, %v917_v59  ;;  %v922_v60 = vmul.f32 %v920_v58, %v920_v58 }
 0xa2b   :  { %v921_v43 = vsub.f32 %v3208_v53, %v919_v48  ;;  %v924_v61 = vsel %vm202_vm1, %v922_v60, 0.0 }
 0xa2c   :  { %925 = vadd.xlane.f32.xlu0 %v924_v61 }
 0xa2d   :  { %v923_v62 = vmul.f32 %v921_v43, %v921_v43 }
 0xa2f   :  { %v927_v63 = vsel %vm202_vm1, %v923_v62, 0.0 }
 0xa30   :  { %928 = vadd.xlane.f32.xlu0 %v927_v63 }
 0xab9   :  { %v926_v6 = vpop.xlane.xlu0 %925 }
 0xaba   :  { %v930_v7 = vmul.f32 0.03125, %v926_v6 }
 0xabc   :  { %v932_v8 = vadd.f32 1e-12, %v930_v7 }
 0xabd   :  { %v929_v9 = vpop.xlane.xlu0 %928 }
 0xabe   :  { %2830 = vrsqrt.f32 %v932_v8  ;;  %v931_v10 = vmul.f32 0.03125, %v929_v9 }
 0xac0   :  { %v933_v11 = vadd.f32 1e-12, %v931_v10 }
 0xac2   :  { %2832 = vrsqrt.f32 %v933_v11 }
 0xac8   :  { %v2831_v12 = vpop.eup %2830 }
 0xac9   :  { %v936_v14 = vmul.f32 %v2831_v12, %v920_v58 }
 0xacb   :  { %v944_v16 = vmul.f32 %v2277_v13, %v936_v14 }
 0xacc   :  { %v2833_v17 = vpop.eup %2832 }
 0xacd   :  { %v937_v18 = vmul.f32 %v2833_v17, %v921_v43  ;;  %v952_v19 = vadd.f32 %v2278_v15, %v944_v16 }
 0xacf   :  { %v945_v20 = vmul.f32 %v2277_v13, %v937_v18  ;;  %2498 = vmatprep.mubr.msk.f32.mxu1 %vm202_vm1, %v952_v19 }
 0xad1   :  { %v953_v21 = vadd.f32 %v2278_v15, %v945_v20 }
 0xad3   :  { %2499 = vmatmul.mubr.msk.f32.vlgmr.msra.gmra.mrb[12].mxu1 %vm202_vm1, %v953_v21 }
 0xba6   :  { %v2500_v38 = vpop.f32.mrb[12].mxu1 }
 0xba7   :  { %v1038_v39 = vadd.f32 %v2500_v38, %v2279_v37  ;;  %v1032_v40 = vpop.f32.mrb[13].mxu1 }
 0xba8   :  { %v1033_v41 = vadd.f32 %v2279_v37, %v1032_v40 }
 0xba9   :  { %v1042_v42 = vmul.f32 0.70710677, %v1038_v39  ;;  %v1090_v24 = vmul.f32 0.5, %v1038_v39 }
 0xbaa   :  { %v1041_v44 = vmul.f32 0.70710677, %v1033_v41  ;;  %v1089_v26 = vmul.f32 0.5, %v1033_v41 }
 0xbab   :  { %v1044_v45 = vand.u32 2147483647, %v1042_v42  ;;  %vm1084_vm4 = vcmp.lt.f32.partialorder %v1042_v42, 0.0 }
 0xbac   :  { %v1043_v46 = vand.u32 2147483647, %v1041_v44  ;;  %vm1083_vm5 = vcmp.lt.f32.partialorder %v1041_v44, 0.0 }
 0xbad   :  { %v1046_v47 = vmul.f32 0.3275911, %v1044_v45  ;;  %v1072_v54 = vsub.f32 0.0, %v1044_v45 }
 0xbae   :  { %v1045_v49 = vmul.f32 0.3275911, %v1043_v46  ;;  %v1071_v55 = vsub.f32 0.0, %v1043_v46 }
 0xbaf   :  { %v1048_v50 = vadd.f32 1.0, %v1046_v47  ;;  %v1074_v57 = vmul.f32 %v1072_v54, %v1044_v45  ;;  %v2287_v54 = vld [vmem:[%s3459_s4 + $0x20] sm:$0xff] }
 0xbb0   :  { %v1047_v51 = vadd.f32 1.0, %v1045_v49  ;;  %v1073_v48 = vmul.f32 %v1071_v55, %v1043_v46  ;;  %v2288_v55 = vld [vmem:[%s3459_s4 + $0x28] sm:$0xff] }
 0xbb1   :  { %2834 = vrcp.f32 %v1048_v50  ;;  %v1077_v61 = vmul.f32 1.442695, %v1074_v57  ;;  %v2289_v57 = vld [vmem:[%s3459_s4 + $0x30] sm:$0xff] }
 0xbb2   :  { %2836 = vrcp.f32 %v1047_v51  ;;  %v1075_v0 = vmul.f32 1.442695, %v1073_v48 }
 0xbb3   :  { %2838 = vpow2.f32 %v1077_v61 }
 0xbb4   :  { %2840 = vpow2.f32 %v1075_v0 }
 0xbbb   :  { %v2835_v56 = vpop.eup %2834 }
 0xbbc   :  { %v2837_v58 = vpop.eup %2836  ;;  %v1054_v59 = vmul.f32 1.0614054, %v2835_v56 }
 0xbbd   :  { %v1053_v60 = vmul.f32 1.0614054, %v2837_v58  ;;  %v2839_v13 = vpop.eup %2838 }
 0xbbe   :  { %v1056_v43 = vadd.f32 -1.4531521, %v1054_v59  ;;  %v2841_v15 = vpop.eup %2840 }
 0xbbf   :  { %v1055_v62 = vadd.f32 -1.4531521, %v1053_v60 }
 0xbc0   :  { %v1058_v63 = vmul.f32 %v2835_v56, %v1056_v43 }
 0xbc1   :  { %v1057_v1 = vmul.f32 %v2837_v58, %v1055_v62 }
 0xbc2   :  { %v1060_v2 = vadd.f32 1.4214138, %v1058_v63 }
 0xbc3   :  { %v1059_v3 = vadd.f32 1.4214138, %v1057_v1  ;;  %v2313_v1 = vld [vmem:[%s3463_s8 + $0x1] ss:$0 sm:$0xff] }
 0xbc4   :  { %v1062_v4 = vmul.f32 %v2835_v56, %v1060_v2 }
 0xbc5   :  { %v1061_v5 = vmul.f32 %v2837_v58, %v1059_v3  ;;  %v2314_v3 = vld [vmem:[%s3464_s9 + $0x1] ss:$0 sm:$0xff] }
 0xbc6   :  { %v1064_v6 = vadd.f32 -0.28449672, %v1062_v4 }
 0xbc7   :  { %v1063_v7 = vadd.f32 -0.28449672, %v1061_v5 }
 0xbc8   :  { %v1066_v8 = vmul.f32 %v2835_v56, %v1064_v6 }
 0xbc9   :  { %v1065_v9 = vmul.f32 %v2837_v58, %v1063_v7 }
 0xbca   :  { %v1068_v10 = vadd.f32 0.2548296, %v1066_v8 }
 0xbcb   :  { %v1067_v11 = vadd.f32 0.2548296, %v1065_v9 }
 0xbcc   :  { %v1070_v12 = vmul.f32 %v2835_v56, %v1068_v10  ;;  %v2699_v56 = vpack.c.bf16 %v2288_v55, %v2287_v54  ;;  %v2315_v10 = vld [vmem:[%s3460_s5 + $0x1] ss:$0 sm:$0xff] }
 0xbcd   :  { %v1069_v14 = vmul.f32 %v2837_v58, %v1067_v11  ;;  %v2290_v58 = vld [vmem:[%s3459_s4 + $0x38] sm:$0xff]  ;;  %s2876_s4 = scalar_lea.vmem %s2246_s20, 32 }
 0xbce   :  { %v1080_v16 = vmul.f32 %v2839_v13, %v1070_v12  ;;  %2700 = vmatprep.subr.bf16.mxu1 %v2699_v56  ;;  %v2703_v59 = vpack.c.bf16 %v2290_v58, %v2289_v57  ;;  %p2877_p0 = scmp.ne.s32.totalorder %s2246_s20, %s2876_s4  ;;  %p2882_p2 = scmp.lt.s32.totalorder %s2876_s4, %s2876_s4 }
 0xbcf   :  { %v1079_v17 = vmul.f32 %v2841_v15, %v1069_v14  ;;  %2702 = vmatpush3.bf16.msra.mxu1 %v2699_v56 }
 0xbd0   :  { %v1082_v18 = vsub.f32 1.0, %v1080_v16  ;;  %2704 = vmatprep.subr.bf16.mxu1 %v2703_v59  ;;  %p2883_p3 = por %p2882_p2, %p2881_p1 }
 0xbd1   :  { %v1081_v19 = vsub.f32 1.0, %v1079_v17 }
 0xbd2   :  { %v1086_v20 = vsub.f32 0.0, %v1082_v18  ;;  %p2884_p4 = pnand %p2883_p3, %p2877_p0 }
 0xbd3   :  { %v1085_v21 = vsub.f32 0.0, %v1081_v19  ;;  %2706 = vmatpush3.bf16.msra.mxu1 %v2703_v59 }
 0xbd4   :  { %v1088_v22 = vsel %vm1084_vm4, %v1086_v20, %v1082_v18 }
 0xbd5   :  { %v1092_v23 = vadd.f32 1.0, %v1088_v22  ;;  %v1087_v25 = vsel %vm1083_vm5, %v1085_v21, %v1081_v19 }
 0xbd6   :  { %v1091_v27 = vadd.f32 1.0, %v1087_v25 }
 0xbd7   :  { %v1094_v30 = vmul.f32 %v1092_v23, %v1090_v24 }
 0xbd8   :  { %v1093_v29 = vmul.f32 %v1091_v27, %v1089_v26 }
 0xbda   :  { %2517 = vmatprep.mubr.msk.f32.mxu0 %vm90_vm0, %v1093_v29 }
 0xbdb   :  { %2518 = vmatmul.mubr.msk.f32.vlgmr.msra.gmra.mrb[4].mxu0 %vm90_vm0, %v1094_v30 }
 0xcae   :  { %v2519_v33 = vpop.f32.mrb[4].mxu0 }
 0xcaf   :  { %v1179_v34 = vadd.f32 %v2519_v33, %v2282_v31  ;;  %v1173_v36 = vpop.f32.mrb[5].mxu0 }
 0xcb0   :  { %v1174_v37 = vadd.f32 %v2282_v31, %v1173_v36 }
 0xcb1   :  { %v3271_v38 = vadd.f32 %v1179_v34, %v3208_v53 }
 0xcb2   :  { %v3274_v40 = vadd.f32 %v1174_v37, %v3206_v52 }
 0xcb3   :  { %v1227_v39 = vsel %vm202_vm1, %v3271_v38, 0.0 }
 0xcb4   :  { %1228 = vadd.xlane.f32.xlu0 %v1227_v39  ;;  %v1224_v41 = vsel %vm202_vm1, %v3274_v40, 0.0 }
 0xcb5   :  { %1225 = vadd.xlane.f32.xlu1 %v1224_v41 }
 0xd41   :  { %v1229_v42 = vpop.xlane.xlu0 %1228 }
 0xd42   :  { %v1231_v44 = vmul.f32 0.03125, %v1229_v42  ;;  %v1226_v45 = vpop.xlane.xlu1 %1225 }
 0xd43   :  { %v1230_v46 = vmul.f32 0.03125, %v1226_v45 }
 0xd44   :  { %v1233_v47 = vsub.f32 %v3271_v38, %v1231_v44 }
 0xd45   :  { %v1232_v53 = vsub.f32 %v3274_v40, %v1230_v46 }
 0xd46   :  { %v1235_v50 = vmul.f32 %v1233_v47, %v1233_v47 }
 0xd47   :  { %v1234_v49 = vmul.f32 %v1232_v53, %v1232_v53 }
 0xd48   :  { %v1239_v51 = vsel %vm202_vm1, %v1235_v50, 0.0 }
 0xd49   :  { %v1236_v52 = vsel %vm202_vm1, %v1234_v49, 0.0 }
 0xd4a   :  { %1237 = vadd.xlane.f32.xlu0 %v1236_v52 }
 0xd4e   :  { %1240 = vadd.xlane.f32.xlu0 %v1239_v51 }
 0xdd7   :  { %v1238_v48 = vpop.xlane.xlu0 %1237 }
 0xdd8   :  { %v1242_v60 = vmul.f32 0.03125, %v1238_v48 }
 0xdda   :  { %v1244_v43 = vadd.f32 1e-12, %v1242_v60 }
 0xddb   :  { %v1241_v61 = vpop.xlane.xlu0 %1240 }
 0xddc   :  { %2842 = vrsqrt.f32 %v1244_v43  ;;  %v1243_v62 = vmul.f32 0.03125, %v1241_v61 }
 0xdde   :  { %v1245_v63 = vadd.f32 1e-12, %v1243_v62 }
 0xde0   :  { %2844 = vrsqrt.f32 %v1245_v63 }
 0xde6   :  { %v2843_v0 = vpop.eup %2842 }
 0xde7   :  { %v1248_v2 = vmul.f32 %v2843_v0, %v1232_v53 }
 0xde9   :  { %v1256_v4 = vmul.f32 %v2313_v1, %v1248_v2 }
 0xdea   :  { %v2845_v5 = vpop.eup %2844 }
 0xdeb   :  { %v1249_v6 = vmul.f32 %v2845_v5, %v1233_v47  ;;  %v1264_v7 = vadd.f32 %v2314_v3, %v1256_v4 }
 0xded   :  { %v1257_v8 = vmul.f32 %v2313_v1, %v1249_v6  ;;  %2528 = vmatprep.mubr.msk.f32.mxu1 %vm202_vm1, %v1264_v7 }
 0xdef   :  { %v1265_v9 = vadd.f32 %v2314_v3, %v1257_v8 }
 0xdf1   :  { %2529 = vmatmul.mubr.msk.f32.vlgmr.msra.gmra.mrb[14].mxu1 %vm202_vm1, %v1265_v9 }
 0xec4   :  { %v2530_v11 = vpop.f32.mrb[14].mxu1 }
 0xec5   :  { %v1350_v12 = vadd.f32 %v2530_v11, %v2315_v10  ;;  %v1344_v13 = vpop.f32.mrb[15].mxu1 }
 0xec6   :  { %v1345_v14 = vadd.f32 %v2315_v10, %v1344_v13  ;;  %v2295_v13 = vld [vmem:[%s3461_s6 + $0x38] sm:$0xff] }
 0xec8   :  { %2535 = vmatprep.mubr.msk.f32.mxu1 %vm339_vm2, %v1345_v14  ;;  %v3308_v15 = vpack.i.bf16 %v1350_v12, %v1345_v14 }
 0xeca   :  { %2791 = vrot.lane.b32.xlu0 %v3308_v15, %s2901_s28 }
 0xf3c   :  { %v2792_v16 = vpop.permute.xlu0 %2791 }
 0xf3d   :  { %v2794_v17 = vunpack.i.h.bf16 %v2792_v16  ;;  %v2793_v18 = vunpack.i.l.bf16 %v2792_v16 }
 0xf3f   :  { %v2707_v19 = vpack.c.bf16 %v2794_v17, %v2793_v18 }
 0xf41   :  { %2709 = vmatprep.subr.msk.bf16.mxu1 %vm3140_vm3, %v2707_v19 }
 0xf42   :  { %2712 = vmatpush3.bf16.xpose.msk.msra.mxu1 %vm3140_vm3, %v2707_v19 }
 0xf49   :  { %2536 = vmatmul.mubr.msk.f32.vlgmr.msra.gmra.mrb[16].mxu1 %vm339_vm2, %v1350_v12 }
0x101c   :  { %v2537_v20 = vpop.f32.mrb[16].mxu1 }
0x101d   :  { %v1443_v21 = vmul.f32 0.25, %v2537_v20  ;;  %v1433_v22 = vpop.f32.mrb[17].mxu1 }
0x101e   :  { %v1442_v23 = vmul.f32 0.25, %v1433_v22 }
0x101f   :  { %v1445_v25 = vadd.f32 %v1443_v21, %v3157_v35 }
0x1020   :  { %v1444_v26 = vadd.f32 %v1442_v23, %v3152_v32 }
0x1021   :  { %v1449_v27 = vsel %vm339_vm2, %v1445_v25, -inf }
0x1022   :  { %1450 = vmax.xlane.f32.xlu0 %v1449_v27  ;;  %v1446_v24 = vsel %vm339_vm2, %v1444_v26, -inf  ;;  %v2293_v27 = vld [vmem:[%s3461_s6 + $0x28] sm:$0xff] }
0x1023   :  { %1447 = vmax.xlane.f32.xlu1 %v1446_v24 }
0x1034   :  { %2796 = vrot.lane.b32.xlu1 %v3308_v15, %s2904_s22 }
0x1038   :  { %1555 = vrot.lane.b32.xlu0 %v1345_v14, %s2903_s30  ;;  %2801 = vrot.lane.b32.xlu1 %v3308_v15, %s2902_s29 }
0x10af   :  { %v1451_v29 = vpop.xlane.xlu0 %1450 }
0x10b0   :  { %v1453_v30 = vsub.f32 %v1445_v25, %v1451_v29  ;;  %v1448_v31 = vpop.xlane.xlu1 %1447 }
0x10b1   :  { %v1452_v33 = vsub.f32 %v1444_v26, %v1448_v31  ;;  %v2292_v26 = vld [vmem:[%s3461_s6 + $0x20] sm:$0xff] }
0x10b2   :  { %v1456_v34 = vmul.f32 1.442695, %v1453_v30  ;;  %v2731_v24 = vpack.c.bf16 %v2293_v27, %v2292_v26 }
0x10b3   :  { %v1454_v36 = vmul.f32 1.442695, %v1452_v33  ;;  %v1556_v59 = vpop.permute.xlu0 %1555  ;;  %v2334_v33 = vld [vmem:[%s3462_s7 + $0x1] ss:$0 sm:$0xff] }
0x10b4   :  { %2846 = vpow2.f32 %v1456_v34  ;;  %v2797_v37 = vpop.permute.xlu1 %2796 }
0x10b5   :  { %v2799_v39 = vunpack.i.h.bf16 %v2797_v37  ;;  %v2798_v41 = vunpack.i.l.bf16 %v2797_v37  ;;  %2848 = vpow2.f32 %v1454_v36 }
0x10b7   :  { %v2713_v42 = vpack.c.bf16 %v2799_v39, %v2798_v41 }
0x10b8   :  { %v2802_v44 = vpop.permute.xlu1 %2801 }
0x10b9   :  { %v2804_v45 = vunpack.i.h.bf16 %v2802_v44  ;;  %v2803_v46 = vunpack.i.l.bf16 %v2802_v44  ;;  %2714 = vmatprep.subr.bf16.mxu1 %v2713_v42 }
0x10ba   :  { %2716 = vmatpush3.bf16.msra.mxu1 %v2713_v42 }
0x10bb   :  { %v2717_v47 = vpack.c.bf16 %v2804_v45, %v2803_v46 }
0x10bd   :  { %2719 = vmatprep.subr.msk.bf16.mxu1 %vm3140_vm3, %v2717_v47 }
0x10be   :  { %v2847_v53 = vpop.eup %2846 }
0x10bf   :  { %v1461_v49 = vsel %vm339_vm2, %v2847_v53, 0.0  ;;  %v2849_v52 = vpop.eup %2848 }
0x10c0   :  { %1462 = vadd.xlane.f32.xlu1 %v1461_v49  ;;  %v1458_v50 = vsel %vm339_vm2, %v2849_v52, 0.0 }
0x10c4   :  { %1459 = vadd.xlane.f32.xlu1 %v1458_v50 }
0x10d5   :  { %1557 = vrot.lane.b32.xlu1 %v1350_v12, %s2903_s30  ;;  %v2294_v12 = vld [vmem:[%s3461_s6 + $0x30] sm:$0xff] }
0x10d6   :  { %v2727_v14 = vpack.c.bf16 %v2295_v13, %v2294_v12  ;;  %v2308_v13 = vld [vmem:[%s3467_s12 + $0x60] sm:$0xff] }
0x10d8   :  { %2728 = vmatprep.subr.bf16.mxu0 %v2727_v14 }
0x10d9   :  { %2730 = vmatpush3.bf16.msra.mxu0 %v2727_v14  ;;  %v2309_v14 = vld [vmem:[%s3467_s12 + $0x68] sm:$0xff] }
0x10da   :  { %2732 = vmatprep.subr.bf16.mxu0 %v2731_v24 }
0x114d   :  { %v1463_v51 = vpop.xlane.xlu1 %1462 }
0x114e   :  { %2850 = vrcp.f32 %v1463_v51 }
0x1151   :  { %v1460_v54 = vpop.xlane.xlu1 %1459 }
0x1152   :  { %2852 = vrcp.f32 %v1460_v54  ;;  %v2299_v54 = vld [vmem:[%s3465_s10 + $0x20] sm:$0xff] }
0x1155   :  { %v1558_v48 = vpop.permute.xlu1 %1557 }
0x1158   :  { %v2851_v55 = vpop.eup %2850 }
0x1159   :  { %v1467_v58 = vmul.f32 %v2851_v55, %v2847_v53  ;;  %v2300_v55 = vld [vmem:[%s3465_s10 + $0x28] sm:$0xff] }
0x115c   :  { %v2853_v56 = vpop.eup %2852 }
0x115d   :  { %v1466_v57 = vmul.f32 %v2853_v56, %v2849_v52  ;;  %v2735_v56 = vpack.c.bf16 %v2300_v55, %v2299_v54 }
0x115f   :  { %2542 = vmatprep.mubr.msk.f32.mxu1 %vm339_vm2, %v1466_v57  ;;  %v2301_v57 = vld [vmem:[%s3465_s10 + $0x30] sm:$0xff] }
0x1160   :  { %2543 = vmatmul.mubr.msk.f32.vlgmr.msra.gmra.mrb[18].mxu1 %vm339_vm2, %v1467_v58  ;;  %v2302_v58 = vld [vmem:[%s3465_s10 + $0x38] sm:$0xff] }
0x1161   :  { %2722 = vmatpush3.bf16.xpose.msk.msra.mxu1 %vm3140_vm3, %v2717_v47  ;;  %2549 = vmatprep.mubr.msk.f32.mxu1 %vm339_vm2, %v1556_v59  ;;  %v2739_v59 = vpack.c.bf16 %v2302_v58, %v2301_v57 }
0x1168   :  { %2550 = vmatmul.mubr.msk.f32.vlgmr.msra.gmra.mrb[20].mxu1 %vm339_vm2, %v1558_v48 }
0x1233   :  { %v2544_v60 = vpop.f32.mrb[18].mxu1 }
0x1234   :  { %v1546_v43 = vpop.f32.mrb[19].mxu1 }
0x123b   :  { %v2551_v61 = vpop.f32.mrb[20].mxu1 }
0x123c   :  { %v1647_v62 = vmul.f32 0.25, %v2551_v61  ;;  %v1637_v63 = vpop.f32.mrb[21].mxu1 }
0x123d   :  { %v1646_v0 = vmul.f32 0.25, %v1637_v63 }
0x123e   :  { %v1649_v1 = vadd.f32 %v1647_v62, %v3157_v35 }
0x123f   :  { %v1648_v2 = vadd.f32 %v1646_v0, %v3152_v32 }
0x1240   :  { %v1653_v3 = vsel %vm339_vm2, %v1649_v1, -inf }
0x1241   :  { %1654 = vmax.xlane.f32.xlu0 %v1653_v3  ;;  %v1650_v28 = vsel %vm339_vm2, %v1648_v2, -inf  ;;  %v2336_v3 = vld [vmem:[%s3470_s15 + $0x1] ss:$0 sm:$0xff] }
0x1242   :  { %1651 = vmax.xlane.f32.xlu1 %v1650_v28 }
0x12ce   :  { %v1655_v4 = vpop.xlane.xlu0 %1654 }
0x12cf   :  { %v1657_v5 = vsub.f32 %v1649_v1, %v1655_v4  ;;  %v1652_v6 = vpop.xlane.xlu1 %1651  ;;  %v2335_v1 = vld [vmem:[%s3469_s14 + $0x1] ss:$0 sm:$0xff] }
0x12d0   :  { %v1656_v7 = vsub.f32 %v1648_v2, %v1652_v6 }
0x12d1   :  { %v1660_v8 = vmul.f32 1.442695, %v1657_v5 }
0x12d2   :  { %v1658_v9 = vmul.f32 1.442695, %v1656_v7 }
0x12d3   :  { %2854 = vpow2.f32 %v1660_v8 }
0x12d4   :  { %2856 = vpow2.f32 %v1658_v9  ;;  %v2304_v9 = vld [vmem:[%s3467_s12 + $0x40] sm:$0xff] }
0x12dd   :  { %v2855_v10 = vpop.eup %2854 }
0x12de   :  { %v1665_v11 = vsel %vm339_vm2, %v2855_v10, 0.0  ;;  %v2857_v35 = vpop.eup %2856 }
0x12df   :  { %1666 = vadd.xlane.f32.xlu1 %v1665_v11  ;;  %v1662_v32 = vsel %vm339_vm2, %v2857_v35, 0.0 }
0x12e3   :  { %1663 = vadd.xlane.f32.xlu1 %v1662_v32  ;;  %v2307_v32 = vld [vmem:[%s3467_s12 + $0x58] sm:$0xff] }
0x12f4   :  { %2806 = vrot.lane.b32.xlu1 %v3308_v15, %s2905_s2 }
0x136c   :  { %v1667_v16 = vpop.xlane.xlu1 %1666 }
0x136d   :  { %2858 = vrcp.f32 %v1667_v16  ;;  %v2751_v16 = vpack.c.bf16 %v2309_v14, %v2308_v13 }
0x1370   :  { %v1664_v17 = vpop.xlane.xlu1 %1663 }
0x1371   :  { %2860 = vrcp.f32 %v1664_v17  ;;  %v2310_v17 = vld [vmem:[%s3467_s12 + $0x70] sm:$0xff] }
0x1374   :  { %v2807_v18 = vpop.permute.xlu1 %2806 }
0x1375   :  { %v2809_v19 = vunpack.i.h.bf16 %v2807_v18  ;;  %v2808_v20 = vunpack.i.l.bf16 %v2807_v18  ;;  %v2311_v18 = vld [vmem:[%s3467_s12 + $0x78] sm:$0xff] }
0x1377   :  { %v2723_v21 = vpack.c.bf16 %v2809_v19, %v2808_v20  ;;  %v2859_v15 = vpop.eup %2858  ;;  %v2755_v19 = vpack.c.bf16 %v2311_v18, %v2310_v17  ;;  %v2337_v20 = vld [vmem:[%s3466_s11 + $0x1] ss:$0 sm:$0xff] }
0x1378   :  { %v1671_v25 = vmul.f32 %v2859_v15, %v2855_v10  ;;  %v2305_v10 = vld [vmem:[%s3467_s12 + $0x48] sm:$0xff] }
0x1379   :  { %2724 = vmatprep.subr.bf16.mxu1 %v2723_v21  ;;  %v2743_v11 = vpack.c.bf16 %v2305_v10, %v2304_v9 }
0x137a   :  { %2726 = vmatpush3.bf16.msra.mxu1 %v2723_v21 }
0x137b   :  { %v2861_v22 = vpop.eup %2860  ;;  %2736 = vmatprep.subr.bf16.mxu1 %v2735_v56 }
0x137c   :  { %v1670_v23 = vmul.f32 %v2861_v22, %v2857_v35  ;;  %v2306_v35 = vld [vmem:[%s3467_s12 + $0x50] sm:$0xff] }
0x137d   :  { %v2747_v12 = vpack.c.bf16 %v2307_v32, %v2306_v35 }
0x137e   :  { %2556 = vmatprep.mubr.msk.f32.mxu1 %vm339_vm2, %v1670_v23 }
0x137f   :  { %2557 = vmatmul.mubr.msk.f32.vlgmr.msra.gmra.mrb[22].mxu1 %vm339_vm2, %v1671_v25 }
0x1380   :  { %2738 = vmatpush3.bf16.msra.mxu1 %v2735_v56 }
0x1381   :  { %2740 = vmatprep.subr.bf16.mxu1 %v2739_v59 }
0x1384   :  { %2742 = vmatpush3.bf16.msra.mxu1 %v2739_v59 }
0x1452   :  { %v2558_v29 = vpop.f32.mrb[22].mxu1 }
0x1453   :  { %v1750_v30 = vpop.f32.mrb[23].mxu1 }
0x1454   :  { %2563 = vmatprep.mubr.msk.f32.mxu0 %vm339_vm2, %v1750_v30 }
0x1455   :  { %2564 = vmatmul.mubr.msk.f32.vlgmr.msra.gmra.mrb[6].mxu0 %vm339_vm2, %v2558_v29 }
0x1456   :  { %2734 = vmatpush3.bf16.msra.mxu0 %v2731_v24  ;;  %2570 = vmatprep.mubr.msk.f32.mxu0 %vm339_vm2, %v1546_v43 }
0x1457   :  { %2744 = vmatprep.subr.bf16.mxu0 %v2743_v11 }
0x145d   :  { %2571 = vmatmul.mubr.msk.f32.vlgmr.msra.gmra.mrb[6].mxu0 %vm339_vm2, %v2544_v60 }
0x145e   :  { %2746 = vmatpush3.bf16.msra.mxu0 %v2743_v11 }
0x145f   :  { %2748 = vmatprep.subr.bf16.mxu0 %v2747_v12 }
0x1462   :  { %2750 = vmatpush3.bf16.msra.mxu0 %v2747_v12  ;;  %v2340_v12 = vld [vmem:[%s3468_s13 + $0x1] ss:$0 sm:$0xff] }
0x1463   :  { %2752 = vmatprep.subr.bf16.mxu0 %v2751_v16 }
0x1466   :  { %2754 = vmatpush3.bf16.msra.mxu0 %v2751_v16 }
0x1467   :  { %2756 = vmatprep.subr.bf16.mxu0 %v2755_v19 }
0x146a   :  { %2758 = vmatpush3.bf16.msra.mxu0 %v2755_v19 }
0x1530   :  { %v2572_v31 = vpop.f32.mrb[6].mxu0 }
0x1531   :  { %v1912_v34 = vpop.f32.mrb[7].mxu0  ;;  %v1922_v36 = vadd.f32 %v2572_v31, %v3271_v38 }
0x1532   :  { %v1921_v37 = vadd.f32 %v1912_v34, %v3274_v40 }
0x1533   :  { %v3370_v41 = vadd.f32 %v2334_v33, %v1922_v36 }
0x1534   :  { %v3368_v39 = vadd.f32 %v2334_v33, %v1921_v37 }
0x1535   :  { %v1934_v44 = vsel %vm202_vm1, %v3370_v41, 0.0 }
0x1536   :  { %v1931_v42 = vsel %vm202_vm1, %v3368_v39, 0.0 }
0x1537   :  { %1932 = vadd.xlane.f32.xlu0 %v1931_v42 }
0x153b   :  { %1935 = vadd.xlane.f32.xlu0 %v1934_v44 }
0x15c4   :  { %v1933_v45 = vpop.xlane.xlu0 %1932 }
0x15c5   :  { %v1937_v46 = vmul.f32 0.03125, %v1933_v45 }
0x15c7   :  { %v1939_v47 = vsub.f32 %v3368_v39, %v1937_v46 }
0x15c8   :  { %v1936_v53 = vpop.xlane.xlu0 %1935 }
0x15c9   :  { %v1938_v38 = vmul.f32 0.03125, %v1936_v53  ;;  %v1941_v49 = vmul.f32 %v1939_v47, %v1939_v47 }
0x15cb   :  { %v1940_v40 = vsub.f32 %v3370_v41, %v1938_v38  ;;  %v1943_v52 = vsel %vm202_vm1, %v1941_v49, 0.0 }
0x15cc   :  { %1944 = vadd.xlane.f32.xlu0 %v1943_v52 }
0x15cd   :  { %v1942_v50 = vmul.f32 %v1940_v40, %v1940_v40 }
0x15cf   :  { %v1946_v51 = vsel %vm202_vm1, %v1942_v50, 0.0 }
0x15d0   :  { %1947 = vadd.xlane.f32.xlu0 %v1946_v51 }
0x1659   :  { %v1945_v48 = vpop.xlane.xlu0 %1944 }
0x165a   :  { %v1949_v60 = vmul.f32 0.03125, %v1945_v48 }
0x165c   :  { %v1951_v43 = vadd.f32 1e-12, %v1949_v60 }
0x165d   :  { %v1948_v61 = vpop.xlane.xlu0 %1947 }
0x165e   :  { %2862 = vrsqrt.f32 %v1951_v43  ;;  %v1950_v62 = vmul.f32 0.03125, %v1948_v61 }
0x1660   :  { %v1952_v63 = vadd.f32 1e-12, %v1950_v62 }
0x1662   :  { %2864 = vrsqrt.f32 %v1952_v63 }
0x1668   :  { %v2863_v0 = vpop.eup %2862 }
0x1669   :  { %v1955_v2 = vmul.f32 %v2863_v0, %v1939_v47 }
0x166b   :  { %v1963_v28 = vmul.f32 %v2335_v1, %v1955_v2 }
0x166c   :  { %v2865_v4 = vpop.eup %2864 }
0x166d   :  { %v1956_v5 = vmul.f32 %v2865_v4, %v1940_v40  ;;  %v1971_v6 = vadd.f32 %v2336_v3, %v1963_v28 }
0x166f   :  { %v1964_v7 = vmul.f32 %v2335_v1, %v1956_v5  ;;  %2581 = vmatprep.mubr.msk.f32.mxu1 %vm202_vm1, %v1971_v6 }
0x1671   :  { %v1972_v8 = vadd.f32 %v2336_v3, %v1964_v7 }
0x1673   :  { %2582 = vmatmul.mubr.msk.f32.vlgmr.msra.gmra.mrb[24].mxu1 %vm202_vm1, %v1972_v8 }
0x1746   :  { %v2583_v21 = vpop.f32.mrb[24].mxu1 }
0x1747   :  { %v2057_v15 = vadd.f32 %v2583_v21, %v2337_v20  ;;  %v2051_v22 = vpop.f32.mrb[25].mxu1 }
0x1748   :  { %v2052_v23 = vadd.f32 %v2337_v20, %v2051_v22 }
0x1749   :  { %v2061_v25 = vmul.f32 0.70710677, %v2057_v15  ;;  %v2109_v11 = vmul.f32 0.5, %v2057_v15 }
0x174a   :  { %v2060_v26 = vmul.f32 0.70710677, %v2052_v23  ;;  %v2108_v9 = vmul.f32 0.5, %v2052_v23 }
0x174b   :  { %v2063_v27 = vand.u32 2147483647, %v2061_v25  ;;  %vm2103_vm6 = vcmp.lt.f32.partialorder %v2061_v25, 0.0 }
0x174c   :  { %v2062_v24 = vand.u32 2147483647, %v2060_v26  ;;  %vm2102_vm7 = vcmp.lt.f32.partialorder %v2060_v26, 0.0 }
0x174d   :  { %v2065_v29 = vmul.f32 0.3275911, %v2063_v27  ;;  %v2091_v34 = vsub.f32 0.0, %v2063_v27 }
0x174e   :  { %v2064_v30 = vmul.f32 0.3275911, %v2062_v24  ;;  %v2090_v36 = vsub.f32 0.0, %v2062_v24 }
0x174f   :  { %v2067_v31 = vadd.f32 1.0, %v2065_v29  ;;  %v2093_v42 = vmul.f32 %v2091_v34, %v2063_v27 }
0x1750   :  { %v2066_v33 = vadd.f32 1.0, %v2064_v30  ;;  %v2092_v46 = vmul.f32 %v2090_v36, %v2062_v24 }
0x1751   :  { %2866 = vrcp.f32 %v2067_v31  ;;  %v2096_v38 = vmul.f32 1.442695, %v2093_v42 }
0x1752   :  { %2868 = vrcp.f32 %v2066_v33  ;;  %v2094_v52 = vmul.f32 1.442695, %v2092_v46  ;;  %v2344_v33 = vld [vmem:[%s3472_s17] ss:$0 sm:$0xff] }
0x1753   :  { %2870 = vpow2.f32 %v2096_v38 }
0x1754   :  { %2872 = vpow2.f32 %v2094_v52 }
0x175b   :  { %v2867_v37 = vpop.eup %2866 }
0x175c   :  { %v2869_v44 = vpop.eup %2868  ;;  %v2073_v45 = vmul.f32 1.0614054, %v2867_v37 }
0x175d   :  { %v2072_v47 = vmul.f32 1.0614054, %v2869_v44  ;;  %v2871_v62 = vpop.eup %2870 }
0x175e   :  { %v2075_v53 = vadd.f32 -1.4531521, %v2073_v45  ;;  %v2873_v0 = vpop.eup %2872 }
0x175f   :  { %v2074_v49 = vadd.f32 -1.4531521, %v2072_v47 }
0x1760   :  { %v2077_v40 = vmul.f32 %v2867_v37, %v2075_v53 }
0x1761   :  { %v2076_v50 = vmul.f32 %v2869_v44, %v2074_v49 }
0x1762   :  { %v2079_v51 = vadd.f32 1.4214138, %v2077_v40 }
0x1763   :  { %v2078_v54 = vadd.f32 1.4214138, %v2076_v50 }
0x1764   :  { %v2081_v55 = vmul.f32 %v2867_v37, %v2079_v51 }
0x1765   :  { %v2080_v56 = vmul.f32 %v2869_v44, %v2078_v54 }
0x1766   :  { %v2083_v57 = vadd.f32 -0.28449672, %v2081_v55 }
0x1767   :  { %v2082_v58 = vadd.f32 -0.28449672, %v2080_v56 }
0x1768   :  { %v2085_v59 = vmul.f32 %v2867_v37, %v2083_v57 }
0x1769   :  { %v2084_v48 = vmul.f32 %v2869_v44, %v2082_v58 }
0x176a   :  { %v2087_v60 = vadd.f32 0.2548296, %v2085_v59 }
0x176b   :  { %v2086_v43 = vadd.f32 0.2548296, %v2084_v48 }
0x176c   :  { %v2089_v61 = vmul.f32 %v2867_v37, %v2087_v60 }
0x176d   :  { %v2088_v63 = vmul.f32 %v2869_v44, %v2086_v43 }
0x176e   :  { %v2099_v1 = vmul.f32 %v2871_v62, %v2089_v61 }
0x176f   :  { %v2098_v2 = vmul.f32 %v2873_v0, %v2088_v63 }
0x1770   :  { %v2101_v3 = vsub.f32 1.0, %v2099_v1 }
0x1771   :  { %v2100_v28 = vsub.f32 1.0, %v2098_v2 }
0x1772   :  { %v2105_v4 = vsub.f32 0.0, %v2101_v3 }
0x1773   :  { %v2104_v5 = vsub.f32 0.0, %v2100_v28 }
0x1774   :  { %v2107_v6 = vsel %vm2103_vm6, %v2105_v4, %v2101_v3 }
0x1775   :  { %v2111_v7 = vadd.f32 1.0, %v2107_v6  ;;  %v2106_v8 = vsel %vm2102_vm7, %v2104_v5, %v2100_v28 }
0x1776   :  { %v2110_v10 = vadd.f32 1.0, %v2106_v8 }
0x1777   :  { %v2113_v32 = vmul.f32 %v2111_v7, %v2109_v11 }
0x1778   :  { %v2112_v35 = vmul.f32 %v2110_v10, %v2108_v9 }
0x177a   :  { %2600 = vmatprep.mubr.msk.f32.mxu0 %vm90_vm0, %v2112_v35 }
0x177b   :  { %2601 = vmatmul.mubr.msk.f32.vlgmr.msra.gmra.mrb[8].mxu0 %vm90_vm0, %v2113_v32 }
0x184e   :  { %v2602_v13 = vpop.f32.mrb[8].mxu0 }
0x184f   :  { %v2198_v14 = vadd.f32 %v2602_v13, %v2340_v12  ;;  %v2192_v16 = vpop.f32.mrb[9].mxu0 }
0x1850   :  { %v2193_v17 = vadd.f32 %v2340_v12, %v2192_v16 }
0x1851   :  { %v2202_v18 = vadd.f32 %v2198_v14, %v3370_v41 }
0x1852   :  { %v2201_v19 = vadd.f32 %v2193_v17, %v3368_v39  ;;  %v2343_v39 = vld [vmem:[%s3471_s16] ss:$0 sm:$0xff] }
0x1853   :  { %v2204_v20 = vrot.slane %v2202_v18, 7 }
0x1855   :  { %v2207_v21 = vsel %vm2206_vm8, %v2201_v19, %v2204_v20 }
0x1856   :  { %v2211_v15 = vsel %vm2210_vm9, %v2207_v21, 0.0 }
0x1857   :  { %2212 = vadd.xlane.f32.xlu1 %v2211_v15 }
0x18e4   :  { %v2213_v22 = vpop.xlane.xlu1 %2212 }
0x18e5   :  { %v2214_v23 = vmul.f32 0.03125, %v2213_v22 }
0x18e7   :  { %v2215_v25 = vsub.f32 %v2207_v21, %v2214_v23 }
0x18e9   :  { %v2216_v26 = vmul.f32 %v2215_v25, %v2215_v25 }
0x18eb   :  { %v2217_v27 = vsel %vm2210_vm9, %v2216_v26, 0.0 }
0x18ec   :  { %2218 = vadd.xlane.f32.xlu0 %v2217_v27 }
0x1979   :  { %v2219_v24 = vpop.xlane.xlu0 %2218 }
0x197a   :  { %v2220_v29 = vmul.f32 0.03125, %v2219_v24 }
0x197c   :  { %v2221_v30 = vadd.f32 1e-12, %v2220_v29 }
0x197e   :  { %2874 = vrsqrt.f32 %v2221_v30 }
0x1988   :  { %v2875_v41 = vpop.eup %2874 }
0x1989   :  { %v2223_v31 = vmul.f32 %v2875_v41, %v2215_v25 }
0x198b   :  { %v2230_v34 = vmul.f32 %v2343_v39, %v2223_v31 }
0x198d   :  { %v2237_v36 = vadd.f32 %v2344_v33, %v2230_v34 }
0x198f   :  { %2238 = vst.msk [vmem:[#allocation2] sm:$0x3] %vm2210_vm9, %v2237_v36 }
0x1990   :  { %2887 = shalt.err (!%p2884_p4)
}
0x1991   :  { %s2888_s10 = scalar_lea.hbm %s3473_s18, 32 }
0x1992   :  { %p2889_p5 = scmp.ne.s32.totalorder %s3473_s18, %s2888_s10  ;;  %p2892_p6 = scmp.lt.u32.totalorder %s2888_s10, %s3473_s18 }
0x1994   :  { %p2894_p7 = pnand %p2892_p6, %p2889_p5 }
0x1996   :  { %2897 = shalt.err (!%p2894_p7)
}
0x1997   :  { %2248 = dma.vmem_to_hbm [thread:$0]  %s2246_s20, 32, %s3473_s18, [#allocation3]  }
0x1998   :  { %2898 = dma.done.wait [#allocation3], 32  }
0x1999   :  { %2899 = vsyncadd [#allocation3], 4294967264 }
0x199a   :  { %2252 = vsyncpa [#allocation3], 1 }

</bundles_post_ra>
